<compile_context>
chip_gen: v7x
topology: tpu7x:2x2x1
jax: 0.10.0
libtpu: 0.0.40
codegen_flags: <defaults>
</compile_context>

<pallas_src>
import numpy as np
import jax
import jax.numpy as jnp
from jax.experimental import pallas as pl
from jax.experimental.pallas import tpu as pltpu

# ----------------------------- config -----------------------------------
OMICS = ["mrna", "meth"]            # omic_channels (sample node types)
FEATS = ["gene"]                    # feature_names (feature node types)
RELATIONS = [
    ("mrna", "to", "gene"),
    ("gene", "to", "mrna"),
    ("meth", "to", "gene"),
    ("gene", "to", "meth"),
]
REL3_USED = [("gene", "to", "mrna"), ("gene", "to", "meth")]  # dst=='gene' unused at layer 3
REL_TAG = {("mrna", "to", "gene"): "m2g", ("gene", "to", "mrna"): "g2m",
           ("meth", "to", "gene"): "me2g", ("gene", "to", "meth"): "g2me"}
INPUT_DIMS = {"mrna": 32, "meth": 24}
NUM_CLASSES = 4
HIDDEN = [16, 8, 8, 8, 16]          # hidden_channels[0..4]
HEADS = 2
N_SAMPLES = 8
N_GENE = 12

H0, H1, H2, H3, H4 = HIDDEN
HC = HEADS * H1                     # 16 (per-relation GAT width; H1 == H3)
C_OUT = H1                          # per-head output channels (== H3)
N_NODES = {"mrna": N_SAMPLES, "meth": N_SAMPLES, "gene": N_GENE}
VMEM = pltpu.MemorySpace.VMEM

# ----------------------- packed slab layouts (static) --------------------
WIDE_COLS = 192                     # widest static matrix (n_src=12 -> 12*HC = 192)
NARROW_COLS = 64


def _make_layout(entries):
    """entries: list of (name, rows, cols). Row offsets are 8-aligned."""
    lay, off = {}, 0
    for name, r, c in entries:
        lay[name] = (off, r, c)
        off += ((r + 7) // 8) * 8
    return lay, off


_WIDE_ENTRIES = [
    ("weblk1_m2g", 8, 128), ("weblk1_g2m", 12, 192),
    ("weblk1_me2g", 8, 128), ("weblk1_g2me", 12, 192),
    ("weblk3_g2m", 12, 192), ("weblk3_g2me", 12, 192),
    ("ttile_8", 16, 128), ("ttile_12", 16, 192),
    ("sel_8", 8, 128), ("sel_12", 12, 192),
    ("attb1_m2g", 1, 128), ("attb1_g2m", 1, 192),
    ("attb1_me2g", 1, 128), ("attb1_g2me", 1, 192),
    ("attb3_g2m", 1, 192), ("attb3_g2me", 1, 192),
]
_NARROW_ENTRIES = [
    ("w_proj", 56, 32), ("b_proj", 1, 32),
    ("w1_m", 16, 48), ("b1_m", 1, 48),
    ("w1_me", 16, 48), ("b1_me", 1, 48),
    ("w1_g", 16, 64), ("b1_g", 1, 64),
    ("bias1", 1, 64),
    ("w3_m", 16, 24), ("b3_m", 1, 24),
    ("w3_me", 16, 24), ("b3_me", 1, 24),
    ("w3_g", 16, 32), ("b3_g", 1, 32),
    ("bias3", 1, 16),
    ("gmap_8", 128, 16), ("gmap_12", 192, 24),
    ("dup_8", 16, 8), ("dup_12", 24, 12),
    ("mask2_8", 16, 16), ("mask2_12", 24, 16),
    ("segblk_8", 16, 16), ("segblk_12", 24, 24),
    ("wi1_m", 8, 16), ("wi1_me", 8, 16), ("bi1", 1, 16),
    ("wi2", 16, 4), ("bi2", 1, 4),
]
_WIDE_LAYOUT, _WIDE_ROWS = _make_layout(_WIDE_ENTRIES)
_NARROW_LAYOUT, _NARROW_ROWS = _make_layout(_NARROW_ENTRIES)

# per-call input slab column offsets: [x_m | x_me | x_g | ea_m2g | ea_g2m | ea_me2g | ea_g2me]
_IN_COLS = 32 + 24 + 16 + 8 + 12 + 8 + 12       # 112
_IN_ROWS = N_GENE                               # 12 (max node / edge row count)


def _slab_get(ref, layout, name):
    off, r, c = layout[name]
    return ref[off:off + r, 0:c]


# ----------------------------- in-kernel GATv2 ---------------------------
def _gat_relation(xl, xr, ea, we_blk, att_b, S, bias, *, n_src, n_dst, concat):
    """Dense GATv2Conv for one relation (PyG semantics), both heads jointly.

    xl (n_src, HC) = lin_l(x_src)+bl ; xr (n_dst, HC) = lin_r(x_dst)+br.
    Pre-activation slab z[d, s*HC+k] = xl[s,k] + xr[d,k] + ea[d,s]*we[k] is built
    entirely with MXU matmuls against precomputed structural matrices.
    """
    f32 = jnp.float32
    ttile, sel, gmap = S["ttile"], S["sel"], S["gmap"]
    dup, mask2, segblk = S["dup"], S["mask2"], S["segblk"]

    # z = broadcast(xl) + tile(xr) + ea*we  -- all three terms on the MXU
    xl_bd = jnp.dot(xl, ttile, preferred_element_type=f32) * sel      # block-diag xl rows
    z = (jnp.dot(jnp.ones((n_dst, n_src), f32), xl_bd, preferred_element_type=f32)
         + jnp.dot(xr, ttile, preferred_element_type=f32)
         + jnp.dot(ea, we_blk, preferred_element_type=f32))
    z = jnp.maximum(z, 0.2 * z)                                       # LeakyReLU(0.2)

    # attention logits for both heads with ONE matmul:
    #   logits[d, h*n_src+s] = sum_c att[h,c] * z[d, s*HC+h*C+c]
    logits = jnp.dot(z * att_b, gmap, preferred_element_type=f32)     # (n_dst, heads*n_src)

    # softmax over sources, per head.  A single row max shared by both heads is
    # mathematically identical (shift invariance) and numerically safe.
    m = jnp.max(logits, axis=-1, keepdims=True)
    p = jnp.exp(logits - m)
    denom = jnp.dot(p, segblk, preferred_element_type=f32)            # per-head row-sum, broadcast
    alpha = p / denom                                                 # exact normalization

    # out[d, h*C+c] = sum_s alpha[d, h*n_src+s] * xl[s, h*C+c]  (block-diag value matmul)
    xl_rep = jnp.dot(dup, xl, preferred_element_type=f32) * mask2     # (heads*n_src, heads*C)
    out = jnp.dot(alpha, xl_rep, preferred_element_type=f32)          # (n_dst, heads*C)
    if not concat:                                                    # mean over heads
        acc = out[:, 0:C_OUT]
        for h in range(1, HEADS):
            acc = acc + out[:, h * C_OUT:(h + 1) * C_OUT]
        out = acc * (1.0 / HEADS)
    return out + bias


# ----------------------------- fused kernel ------------------------------
def _birgat_kernel(in_ref, wide_ref, narrow_ref, o_ref):
    f32 = jnp.float32
    _w = lambda n: _slab_get(wide_ref, _WIDE_LAYOUT, n)
    _n = lambda n: _slab_get(narrow_ref, _NARROW_LAYOUT, n)

    # shared structural matrices, keyed by source-node count (loaded once each)
    S = {ns: dict(ttile=_w(f"ttile_{ns}"), sel=_w(f"sel_{ns}"), gmap=_n(f"gmap_{ns}"),
                  dup=_n(f"dup_{ns}"), mask2=_n(f"mask2_{ns}"), segblk=_n(f"segblk_{ns}"))
         for ns in (N_SAMPLES, N_GENE)}

    # ---- unpack the per-call activation/edge slab ----
    x_om = in_ref[0:N_SAMPLES, 0:56]          # [x_mrna | x_meth]
    x_g = in_ref[0:N_GENE, 56:72]
    ea_m2g = in_ref[0:N_GENE, 72:80]
    ea_g2m = in_ref[0:N_SAMPLES, 80:92]
    ea_me2g = in_ref[0:N_GENE, 92:100]
    ea_g2me = in_ref[0:N_SAMPLES, 100:112]

    # ---- omic projection layers: one block-diagonal matmul for both omics ----
    proj = jnp.dot(x_om, _n("w_proj"), preferred_element_type=f32) + _n("b_proj")
    x0_m, x0_me = proj[:, 0:H0], proj[:, H0:2 * H0]

    # ---- layer 1: per-node-type fused lin_l / lin_r / self-loop matmuls ----
    # w1_m  cols: [xl m2g | xr g2m | self_mrna (head-repeated)]
    # w1_me cols: [xl me2g | xr g2me | self_meth (head-repeated)]
    # w1_g  cols: [xl g2m | xl g2me | xr m2g | xr me2g]
    a1_m = jnp.dot(x0_m, _n("w1_m"), preferred_element_type=f32) + _n("b1_m")
    a1_me = jnp.dot(x0_me, _n("w1_me"), preferred_element_type=f32) + _n("b1_me")
    a1_g = jnp.dot(x_g, _n("w1_g"), preferred_element_type=f32) + _n("b1_g")

    bias1 = _n("bias1")
    o_m2g = _gat_relation(a1_m[:, 0:16], a1_g[:, 32:48], ea_m2g, _w("weblk1_m2g"),
                          _w("attb1_m2g"), S[N_SAMPLES], bias1[:, 0:16],
                          n_src=N_SAMPLES, n_dst=N_GENE, concat=True)
    o_g2m = _gat_relation(a1_g[:, 0:16], a1_m[:, 16:32], ea_g2m, _w("weblk1_g2m"),
                          _w("attb1_g2m"), S[N_GENE], bias1[:, 16:32],
                          n_src=N_GENE, n_dst=N_SAMPLES, concat=True)
    o_me2g = _gat_relation(a1_me[:, 0:16], a1_g[:, 48:64], ea_me2g, _w("weblk1_me2g"),
                           _w("attb1_me2g"), S[N_SAMPLES], bias1[:, 32:48],
                           n_src=N_SAMPLES, n_dst=N_GENE, concat=True)
    o_g2me = _gat_relation(a1_g[:, 16:32], a1_me[:, 16:32], ea_g2me, _w("weblk1_g2me"),
                           _w("attb1_g2me"), S[N_GENE], bias1[:, 48:64],
                           n_src=N_GENE, n_dst=N_SAMPLES, concat=True)

    # HeteroConv sum + head-repeated self-loop residual (folded into w1_*) + ReLU
    x1_g = jnp.maximum(o_m2g + o_me2g, 0.0)                 # gene has no self-loop residual
    x1_m = jnp.maximum(o_g2m + a1_m[:, 32:48], 0.0)
    x1_me = jnp.maximum(o_g2me + a1_me[:, 32:48], 0.0)

    # three_layers=False  ->  x2 = x1 (conv2 / self_loops2 unused)

    # ---- layer 3 (concat=False); dst=='gene' relations skipped (outputs unused) ----
    # w3_m  cols: [xr g2m | self_mrna] ; w3_me cols: [xr g2me | self_meth]
    # w3_g  cols: [xl g2m | xl g2me]
    a3_m = jnp.dot(x1_m, _n("w3_m"), preferred_element_type=f32) + _n("b3_m")
    a3_me = jnp.dot(x1_me, _n("w3_me"), preferred_element_type=f32) + _n("b3_me")
    a3_g = jnp.dot(x1_g, _n("w3_g"), preferred_element_type=f32) + _n("b3_g")

    bias3 = _n("bias3")
    o3_m = _gat_relation(a3_g[:, 0:16], a3_m[:, 0:16], ea_g2m, _w("weblk3_g2m"),
                         _w("attb3_g2m"), S[N_GENE], bias3[:, 0:H3],
                         n_src=N_GENE, n_dst=N_SAMPLES, concat=False)
    o3_me = _gat_relation(a3_g[:, 16:32], a3_me[:, 0:16], ea_g2me, _w("weblk3_g2me"),
                          _w("attb3_g2me"), S[N_GENE], bias3[:, H3:2 * H3],
                          n_src=N_GENE, n_dst=N_SAMPLES, concat=False)

    x3_m = jnp.maximum(o3_m + a3_m[:, 16:24], 0.0)
    x3_me = jnp.maximum(o3_me + a3_me[:, 16:24], 0.0)

    # ---- stack omic views + linear integrator (per-sample concat folded into split wi1) ----
    # TODO(synk): LinearIntegration source not provided; implemented as
    #             flatten -> Linear -> ReLU -> Linear (standard linear integrator).
    h = (jnp.dot(x3_m, _n("wi1_m"), preferred_element_type=f32)
         + jnp.dot(x3_me, _n("wi1_me"), preferred_element_type=f32) + _n("bi1"))
    h = jnp.maximum(h, 0.0)
    logits = jnp.dot(h, _n("wi2"), preferred_element_type=f32) + _n("bi2")
    o_ref[...] = logits.astype(o_ref.dtype)


# ----------------------------- weight packing (one-time) -----------------
def pack_params(params):
    """Fuse all module weights + GATv2 structural matrices into two static slabs."""
    p = params
    C = C_OUT

    def A(x):
        return np.asarray(x, np.float32)

    wide = np.zeros((_WIDE_ROWS, WIDE_COLS), np.float32)
    narrow = np.zeros((_NARROW_ROWS, NARROW_COLS), np.float32)

    def put(slab, lay, name, mat):
        off, r, c = lay[name]
        mat = A(mat)
        assert mat.shape == (r, c), (name, mat.shape, (r, c))
        slab[off:off + r, :c] = mat

    # shared structural matrices (depend only on n_src)
    for ns in (N_SAMPLES, N_GENE):
        eye_s = np.eye(ns, dtype=np.float32)
        eye_h = np.eye(HEADS, dtype=np.float32)
        put(wide, _WIDE_LAYOUT, f"ttile_{ns}", np.tile(np.eye(HC, dtype=np.float32), (1, ns)))
        put(wide, _WIDE_LAYOUT, f"sel_{ns}", np.kron(eye_s, np.ones((1, HC), np.float32)))
        g = (eye_s[:, None, None, None, :] * eye_h[None, :, None, :, None]
             * np.ones((1, 1, C, 1, 1), np.float32))
        put(narrow, _NARROW_LAYOUT, f"gmap_{ns}", g.reshape(ns * HC, HEADS * ns))
        put(narrow, _NARROW_LAYOUT, f"dup_{ns}", np.tile(eye_s, (HEADS, 1)))
        put(narrow, _NARROW_LAYOUT, f"mask2_{ns}", np.kron(eye_h, np.ones((ns, C), np.float32)))
        put(narrow, _NARROW_LAYOUT, f"segblk_{ns}", np.kron(eye_h, np.ones((ns, ns), np.float32)))

    # per-relation edge-weight blocks + attention rows
    for rel in RELATIONS:
        ns = N_NODES[rel[0]]
        put(wide, _WIDE_LAYOUT, f"weblk1_{REL_TAG[rel]}",
            np.kron(np.eye(ns, dtype=np.float32), A(p["conv1"][rel]["we"]).reshape(1, HC)))
        put(wide, _WIDE_LAYOUT, f"attb1_{REL_TAG[rel]}",
            np.tile(A(p["conv1"][rel]["att"]).reshape(1, HC), (1, ns)))
    for rel in REL3_USED:
        ns = N_NODES[rel[0]]
        put(wide, _WIDE_LAYOUT, f"weblk3_{REL_TAG[rel]}",
            np.kron(np.eye(ns, dtype=np.float32), A(p["conv3"][rel]["we"]).reshape(1, HC)))
        put(wide, _WIDE_LAYOUT, f"attb3_{REL_TAG[rel]}",
            np.tile(A(p["conv3"][rel]["att"]).reshape(1, HC), (1, ns)))

    # projection: block-diagonal so both omics project with one matmul
    d_m, d_me = INPUT_DIMS["mrna"], INPUT_DIMS["meth"]
    w_proj = np.zeros((d_m + d_me, 2 * H0), np.float32)
    w_proj[:d_m, :H0] = A(p["proj"]["mrna"]["w"])
    w_proj[d_m:, H0:] = A(p["proj"]["meth"]["w"])
    put(narrow, _NARROW_LAYOUT, "w_proj", w_proj)
    put(narrow, _NARROW_LAYOUT, "b_proj",
        np.concatenate([A(p["proj"]["mrna"]["b"]), A(p["proj"]["meth"]["b"])], axis=1))

    m2g, g2m, me2g, g2me = RELATIONS
    c1, s1 = p["conv1"], p["self1"]
    put(narrow, _NARROW_LAYOUT, "w1_m",
        np.concatenate([A(c1[m2g]["wl"]), A(c1[g2m]["wr"]),
                        np.tile(A(s1["mrna"]["w"]), (1, HEADS))], axis=1))
    put(narrow, _NARROW_LAYOUT, "b1_m",
        np.concatenate([A(c1[m2g]["bl"]), A(c1[g2m]["br"]),
                        np.tile(A(s1["mrna"]["b"]), (1, HEADS))], axis=1))
    put(narrow, _NARROW_LAYOUT, "w1_me",
        np.concatenate([A(c1[me2g]["wl"]), A(c1[g2me]["wr"]),
                        np.tile(A(s1["meth"]["w"]), (1, HEADS))], axis=1))
    put(narrow, _NARROW_LAYOUT, "b1_me",
        np.concatenate([A(c1[me2g]["bl"]), A(c1[g2me]["br"]),
                        np.tile(A(s1["meth"]["b"]), (1, HEADS))], axis=1))
    put(narrow, _NARROW_LAYOUT, "w1_g",
        np.concatenate([A(c1[g2m]["wl"]), A(c1[g2me]["wl"]),
                        A(c1[m2g]["wr"]), A(c1[me2g]["wr"])], axis=1))
    put(narrow, _NARROW_LAYOUT, "b1_g",
        np.concatenate([A(c1[g2m]["bl"]), A(c1[g2me]["bl"]),
                        A(c1[m2g]["br"]), A(c1[me2g]["br"])], axis=1))
    put(narrow, _NARROW_LAYOUT, "bias1",
        np.concatenate([A(c1[r]["bias"]) for r in RELATIONS], axis=1))

    c3, s3 = p["conv3"], p["self3"]
    put(narrow, _NARROW_LAYOUT, "w3_m", np.concatenate([A(c3[g2m]["wr"]), A(s3["mrna"]["w"])], axis=1))
    put(narrow, _NARROW_LAYOUT, "b3_m", np.concatenate([A(c3[g2m]["br"]), A(s3["mrna"]["b"])], axis=1))
    put(narrow, _NARROW_LAYOUT, "w3_me", np.concatenate([A(c3[g2me]["wr"]), A(s3["meth"]["w"])], axis=1))
    put(narrow, _NARROW_LAYOUT, "b3_me", np.concatenate([A(c3[g2me]["br"]), A(s3["meth"]["b"])], axis=1))
    put(narrow, _NARROW_LAYOUT, "w3_g", np.concatenate([A(c3[g2m]["wl"]), A(c3[g2me]["wl"])], axis=1))
    put(narrow, _NARROW_LAYOUT, "b3_g", np.concatenate([A(c3[g2m]["bl"]), A(c3[g2me]["bl"])], axis=1))
    put(narrow, _NARROW_LAYOUT, "bias3", np.concatenate([A(c3[g2m]["bias"]), A(c3[g2me]["bias"])], axis=1))

    integ = p["integ"]
    wi1 = A(integ["w1"])
    put(narrow, _NARROW_LAYOUT, "wi1_m", wi1[:H3, :])
    put(narrow, _NARROW_LAYOUT, "wi1_me", wi1[H3:2 * H3, :])
    put(narrow, _NARROW_LAYOUT, "bi1", A(integ["b1"]))
    put(narrow, _NARROW_LAYOUT, "wi2", A(integ["w2"]))
    put(narrow, _NARROW_LAYOUT, "bi2", A(integ["b2"]))

    return jnp.asarray(wide), jnp.asarray(narrow)


# ----------------------------- forward -----------------------------------
def birgat_forward(x_dict, edge_attr_dict, wide_slab, narrow_slab):
    # pack all per-call activations + edge attrs into ONE lane-packed slab (1 DMA)
    def pad_rows(a, rows=_IN_ROWS):
        return jnp.pad(a, ((0, rows - a.shape[0]), (0, 0)))

    in_slab = jnp.concatenate([
        pad_rows(x_dict["mrna"]),
        pad_rows(x_dict["meth"]),
        x_dict["gene"],
        edge_attr_dict[("mrna", "to", "gene")],
        pad_rows(edge_attr_dict[("gene", "to", "mrna")]),
        edge_attr_dict[("meth", "to", "gene")],
        pad_rows(edge_attr_dict[("gene", "to", "meth")]),
    ], axis=1).astype(jnp.float32)

    # Single fused launch, no grid: total operand footprint < 0.5 MiB, far below
    # VMEM on every generation (incl. v7x's 64 MiB), so tiling would only add
    # per-step overhead.
    return pl.pallas_call(
        _birgat_kernel,
        out_shape=jax.ShapeDtypeStruct((N_SAMPLES, NUM_CLASSES), jnp.float32),
        in_specs=[pl.BlockSpec(memory_space=VMEM)] * 3,
        out_specs=pl.BlockSpec(memory_space=VMEM),
    )(in_slab, wide_slab, narrow_slab)


# ----------------------------- pure-JAX reference ------------------------
def _reference_forward(params, x_dict, edge_attr_dict):
    hi = jax.lax.Precision.HIGHEST

    def lin(x, w, b):
        return jnp.dot(x, w, precision=hi) + b

    def gat(x_src, x_dst, ea, prm, concat):
        heads, c = prm["att"].shape
        xl = lin(x_src, prm["wl"], prm["bl"])
        xr = lin(x_dst, prm["wr"], prm["br"])
        z = xl[None, :, :] + xr[:, None, :] + ea[:, :, None] * prm["we"][0][None, None, :]
        z = jnp.where(z > 0, z, 0.2 * z)
        zh = z.reshape(z.shape[0], z.shape[1], heads, c)
        logit = jnp.einsum("dshc,hc->dsh", zh, prm["att"], precision=hi)
        alpha = jax.nn.softmax(logit, axis=1)
        xlh = xl.reshape(-1, heads, c)
        out = jnp.einsum("dsh,shc->dhc", alpha, xlh, precision=hi)
        out = out.reshape(out.shape[0], heads * c) if concat else out.mean(axis=1)
        return out + prm["bias"]

    x0 = {o: lin(x_dict[o], params["proj"][o]["w"], params["proj"][o]["b"]) for o in OMICS}
    x0["gene"] = x_dict["gene"]

    agg = {k: 0.0 for k in N_NODES}
    for rel in RELATIONS:
        src, _, dst = rel
        agg[dst] = agg[dst] + gat(x0[src], x0[dst], edge_attr_dict[rel], params["conv1"][rel], True)
    x1 = {"gene": jax.nn.relu(agg["gene"])}
    for o in OMICS:
        s = lin(x0[o], params["self1"][o]["w"], params["self1"][o]["b"])
        x1[o] = jax.nn.relu(agg[o] + jnp.tile(s, (1, HEADS)))

    agg3 = {k: 0.0 for k in N_NODES}
    for rel in RELATIONS:
        src, _, dst = rel
        agg3[dst] = agg3[dst] + gat(x1[src], x1[dst], edge_attr_dict[rel], params["conv3"][rel], False)
    x3 = {}
    for o in OMICS:
        s = lin(x1[o], params["self3"][o]["w"], params["self3"][o]["b"])
        x3[o] = jax.nn.relu(agg3[o] + s)

    flat = jnp.concatenate([x3[o] for o in OMICS], axis=1)
    h = jax.nn.relu(lin(flat, params["integ"]["w1"], params["integ"]["b1"]))
    return lin(h, params["integ"]["w2"], params["integ"]["b2"])


# ----------------------------- params -----------------------------------
def make_params(key):
    keys = iter(jax.random.split(key, 512))

    def u(shape, scale=0.2):
        return jax.random.uniform(next(keys), shape, jnp.float32, -scale, scale)

    def gat_params(in_dim, out_c):
        return {
            "wl": u((in_dim, HEADS * out_c)),
            "bl": u((1, HEADS * out_c)),
            "wr": u((in_dim, HEADS * out_c)),
            "br": u((1, HEADS * out_c)),
            "we": u((1, HEADS * out_c)),          # lin_edge (edge_dim=1, no bias)
            "att": u((HEADS, out_c)),
        }

    params = {
        "proj": {o: {"w": u((INPUT_DIMS[o], H0)), "b": u((1, H0))} for o in OMICS},
        "conv1": {},
        "self1": {o: {"w": u((H0, H1)), "b": u((1, H1))} for o in OMICS},
        "conv3": {},
        "self3": {o: {"w": u((H2 * HEADS, H3)), "b": u((1, H3))} for o in OMICS},
        "integ": {
            "w1": u((len(OMICS) * H3, H4)), "b1": u((1, H4)),
            "w2": u((H4, NUM_CLASSES)), "b2": u((1, NUM_CLASSES)),
        },
    }
    for rel in RELATIONS:
        p1 = gat_params(H0, H1)
        p1["bias"] = u((1, HEADS * H1))           # concat=True bias
        params["conv1"][rel] = p1
        p3 = gat_params(H1 * HEADS, H3)
        p3["bias"] = u((1, H3))                   # concat=False bias
        params["conv3"][rel] = p3
    return params


# ----------------------------- main -----------------------------------
if __name__ == "__main__":
    key = jax.random.PRNGKey(0)
    k_param, k_x1, k_x2, k_x3, k_e = jax.random.split(key, 5)
    params = make_params(k_param)
    wide_slab, narrow_slab = pack_params(params)   # one-time weight fusion/packing

    x_dict = {
        "mrna": jax.random.normal(k_x1, (N_SAMPLES, INPUT_DIMS["mrna"]), jnp.float32),
        "meth": jax.random.normal(k_x2, (N_SAMPLES, INPUT_DIMS["meth"]), jnp.float32),
        # feature nodes are not projected, so they already have dim hidden[0]
        "gene": jax.random.normal(k_x3, (N_GENE, H0), jnp.float32),
    }

    # dense edge attributes (edge_dim=1), complete bipartite per relation: (Nd, Ns)
    edge_attr_dict = {}
    for rel, ek in zip(RELATIONS, jax.random.split(k_e, len(RELATIONS))):
        src, _, dst = rel
        edge_attr_dict[rel] = jax.random.uniform(
            ek, (N_NODES[dst], N_NODES[src]), jnp.float32)

    fwd = jax.jit(birgat_forward)
    logits = fwd(x_dict, edge_attr_dict, wide_slab, narrow_slab)
    jax.block_until_ready(logits)
    assert logits.shape == (N_SAMPLES, NUM_CLASSES), logits.shape

    # cross-check against an independent pure-JAX implementation (loose bound:
    # well above f32/MXU numerics, well below any structural/packing error)
    ref = _reference_forward(params, x_dict, edge_attr_dict)
    err = float(jnp.max(jnp.abs(logits - ref)))
    scale = float(jnp.max(jnp.abs(ref)))
    assert err <= 1e-3 + 1e-2 * scale, (err, scale)

    print("KERNEL_OK")
</pallas_src>

<mosaic_0001>
module attributes {stable_mosaic.version = 11 : i64} {
  func.func @_birgat_kernel(%arg0: memref<12x112xf32, #tpu.memory_space<vmem>>, %arg1: memref<184x192xf32, #tpu.memory_space<vmem>>, %arg2: memref<712x64xf32, #tpu.memory_space<vmem>>, %arg3: memref<8x4xf32, #tpu.memory_space<vmem>>) attributes {dimension_semantics = [], scalar_prefetch = 0 : i64, scratch_operands = 0 : i64, tpu.core_type = #tpu.core_type<tc>} {
    %c80 = arith.constant 80 : index
    %c0 = arith.constant 0 : index
    %0 = vector.load %arg1[%c80, %c0] : memref<184x192xf32, #tpu.memory_space<vmem>>, vector<16x128xf32>
    %c112 = arith.constant 112 : index
    %c0_0 = arith.constant 0 : index
    %1 = vector.load %arg1[%c112, %c0_0] : memref<184x192xf32, #tpu.memory_space<vmem>>, vector<8x128xf32>
    %c224 = arith.constant 224 : index
    %c0_1 = arith.constant 0 : index
    %2 = vector.load %arg2[%c224, %c0_1] : memref<712x64xf32, #tpu.memory_space<vmem>>, vector<128x16xf32>
    %c544 = arith.constant 544 : index
    %c0_2 = arith.constant 0 : index
    %3 = vector.load %arg2[%c544, %c0_2] : memref<712x64xf32, #tpu.memory_space<vmem>>, vector<16x8xf32>
    %c584 = arith.constant 584 : index
    %c0_3 = arith.constant 0 : index
    %4 = vector.load %arg2[%c584, %c0_3] : memref<712x64xf32, #tpu.memory_space<vmem>>, vector<16x16xf32>
    %c624 = arith.constant 624 : index
    %c0_4 = arith.constant 0 : index
    %5 = vector.load %arg2[%c624, %c0_4] : memref<712x64xf32, #tpu.memory_space<vmem>>, vector<16x16xf32>
    %c96 = arith.constant 96 : index
    %c0_5 = arith.constant 0 : index
    %6 = vector.load %arg1[%c96, %c0_5] : memref<184x192xf32, #tpu.memory_space<vmem>>, vector<16x192xf32>
    %c120 = arith.constant 120 : index
    %c0_6 = arith.constant 0 : index
    %7 = vector.load %arg1[%c120, %c0_6] : memref<184x192xf32, #tpu.memory_space<vmem>>, vector<12x192xf32>
    %c352 = arith.constant 352 : index
    %c0_7 = arith.constant 0 : index
    %8 = vector.load %arg2[%c352, %c0_7] : memref<712x64xf32, #tpu.memory_space<vmem>>, vector<192x24xf32>
    %c560 = arith.constant 560 : index
    %c0_8 = arith.constant 0 : index
    %9 = vector.load %arg2[%c560, %c0_8] : memref<712x64xf32, #tpu.memory_space<vmem>>, vector<24x12xf32>
    %c600 = arith.constant 600 : index
    %c0_9 = arith.constant 0 : index
    %10 = vector.load %arg2[%c600, %c0_9] : memref<712x64xf32, #tpu.memory_space<vmem>>, vector<24x16xf32>
    %c640 = arith.constant 640 : index
    %c0_10 = arith.constant 0 : index
    %11 = vector.load %arg2[%c640, %c0_10] : memref<712x64xf32, #tpu.memory_space<vmem>>, vector<24x24xf32>
    %c0_11 = arith.constant 0 : index
    %c0_12 = arith.constant 0 : index
    %12 = vector.load %arg0[%c0_11, %c0_12] : memref<12x112xf32, #tpu.memory_space<vmem>>, vector<8x56xf32>
    %c0_13 = arith.constant 0 : index
    %c56 = arith.constant 56 : index
    %13 = vector.load %arg0[%c0_13, %c56] : memref<12x112xf32, #tpu.memory_space<vmem>>, vector<12x16xf32>
    %c0_14 = arith.constant 0 : index
    %c72 = arith.constant 72 : index
    %14 = vector.load %arg0[%c0_14, %c72] : memref<12x112xf32, #tpu.memory_space<vmem>>, vector<12x8xf32>
    %c0_15 = arith.constant 0 : index
    %c80_16 = arith.constant 80 : index
    %15 = vector.load %arg0[%c0_15, %c80_16] : memref<12x112xf32, #tpu.memory_space<vmem>>, vector<8x12xf32>
    %c0_17 = arith.constant 0 : index
    %c92 = arith.constant 92 : index
    %16 = vector.load %arg0[%c0_17, %c92] : memref<12x112xf32, #tpu.memory_space<vmem>>, vector<12x8xf32>
    %c0_18 = arith.constant 0 : index
    %c100 = arith.constant 100 : index
    %17 = vector.load %arg0[%c0_18, %c100] : memref<12x112xf32, #tpu.memory_space<vmem>>, vector<8x12xf32>
    %c0_19 = arith.constant 0 : index
    %c0_20 = arith.constant 0 : index
    %18 = vector.load %arg2[%c0_19, %c0_20] : memref<712x64xf32, #tpu.memory_space<vmem>>, vector<56x32xf32>
    %cst = arith.constant dense<0.000000e+00> : vector<8x32xf32>
    %19 = tpu.matmul %12, %18, %cst {dimension_numbers = #tpu.dot_dimension_numbers<[1], [0], [0], [1], [0, 0, 1, 1], [], []>} : vector<8x56xf32>, vector<56x32xf32>, vector<8x32xf32> -> vector<8x32xf32>
    %c56_21 = arith.constant 56 : index
    %c0_22 = arith.constant 0 : index
    %20 = vector.load %arg2[%c56_21, %c0_22] : memref<712x64xf32, #tpu.memory_space<vmem>>, vector<1x32xf32>
    %21 = vector.broadcast %20 : vector<1x32xf32> to vector<8x32xf32>
    %22 = arith.addf %19, %21 : vector<8x32xf32>
    %23 = vector.extract_strided_slice %22 {offsets = [0, 0], sizes = [8, 16], strides = [1, 1]} : vector<8x32xf32> to vector<8x16xf32>
    %24 = vector.extract_strided_slice %22 {offsets = [0, 16], sizes = [8, 16], strides = [1, 1]} : vector<8x32xf32> to vector<8x16xf32>
    %c64 = arith.constant 64 : index
    %c0_23 = arith.constant 0 : index
    %25 = vector.load %arg2[%c64, %c0_23] : memref<712x64xf32, #tpu.memory_space<vmem>>, vector<16x48xf32>
    %cst_24 = arith.constant dense<0.000000e+00> : vector<8x48xf32>
    %26 = tpu.matmul %23, %25, %cst_24 {dimension_numbers = #tpu.dot_dimension_numbers<[1], [0], [0], [1], [0, 0, 1, 1], [], []>} : vector<8x16xf32>, vector<16x48xf32>, vector<8x48xf32> -> vector<8x48xf32>
    %c80_25 = arith.constant 80 : index
    %c0_26 = arith.constant 0 : index
    %27 = vector.load %arg2[%c80_25, %c0_26] : memref<712x64xf32, #tpu.memory_space<vmem>>, vector<1x48xf32>
    %28 = vector.broadcast %27 : vector<1x48xf32> to vector<8x48xf32>
    %29 = arith.addf %26, %28 : vector<8x48xf32>
    %c88 = arith.constant 88 : index
    %c0_27 = arith.constant 0 : index
    %30 = vector.load %arg2[%c88, %c0_27] : memref<712x64xf32, #tpu.memory_space<vmem>>, vector<16x48xf32>
    %cst_28 = arith.constant dense<0.000000e+00> : vector<8x48xf32>
    %31 = tpu.matmul %24, %30, %cst_28 {dimension_numbers = #tpu.dot_dimension_numbers<[1], [0], [0], [1], [0, 0, 1, 1], [], []>} : vector<8x16xf32>, vector<16x48xf32>, vector<8x48xf32> -> vector<8x48xf32>
    %c104 = arith.constant 104 : index
    %c0_29 = arith.constant 0 : index
    %32 = vector.load %arg2[%c104, %c0_29] : memref<712x64xf32, #tpu.memory_space<vmem>>, vector<1x48xf32>
    %33 = vector.broadcast %32 : vector<1x48xf32> to vector<8x48xf32>
    %34 = arith.addf %31, %33 : vector<8x48xf32>
    %c112_30 = arith.constant 112 : index
    %c0_31 = arith.constant 0 : index
    %35 = vector.load %arg2[%c112_30, %c0_31] : memref<712x64xf32, #tpu.memory_space<vmem>>, vector<16x64xf32>
    %cst_32 = arith.constant dense<0.000000e+00> : vector<12x64xf32>
    %36 = tpu.matmul %13, %35, %cst_32 {dimension_numbers = #tpu.dot_dimension_numbers<[1], [0], [0], [1], [0, 0, 1, 1], [], []>} : vector<12x16xf32>, vector<16x64xf32>, vector<12x64xf32> -> vector<12x64xf32>
    %c128 = arith.constant 128 : index
    %c0_33 = arith.constant 0 : index
    %37 = vector.load %arg2[%c128, %c0_33] : memref<712x64xf32, #tpu.memory_space<vmem>>, vector<1x64xf32>
    %38 = vector.broadcast %37 : vector<1x64xf32> to vector<12x64xf32>
    %39 = arith.addf %36, %38 : vector<12x64xf32>
    %c136 = arith.constant 136 : index
    %c0_34 = arith.constant 0 : index
    %40 = vector.load %arg2[%c136, %c0_34] : memref<712x64xf32, #tpu.memory_space<vmem>>, vector<1x64xf32>
    %41 = vector.extract_strided_slice %29 {offsets = [0, 0], sizes = [8, 16], strides = [1, 1]} : vector<8x48xf32> to vector<8x16xf32>
    %42 = vector.extract_strided_slice %39 {offsets = [0, 32], sizes = [12, 16], strides = [1, 1]} : vector<12x64xf32> to vector<12x16xf32>
    %c0_35 = arith.constant 0 : index
    %c0_36 = arith.constant 0 : index
    %43 = vector.load %arg1[%c0_35, %c0_36] : memref<184x192xf32, #tpu.memory_space<vmem>>, vector<8x128xf32>
    %c136_37 = arith.constant 136 : index
    %c0_38 = arith.constant 0 : index
    %44 = vector.load %arg1[%c136_37, %c0_38] : memref<184x192xf32, #tpu.memory_space<vmem>>, vector<1x128xf32>
    %45 = vector.extract_strided_slice %40 {offsets = [0, 0], sizes = [1, 16], strides = [1, 1]} : vector<1x64xf32> to vector<1x16xf32>
    %cst_39 = arith.constant dense<0.000000e+00> : vector<8x128xf32>
    %46 = tpu.matmul %41, %0, %cst_39 {dimension_numbers = #tpu.dot_dimension_numbers<[1], [0], [0], [1], [0, 0, 1, 1], [], []>} : vector<8x16xf32>, vector<16x128xf32>, vector<8x128xf32> -> vector<8x128xf32>
    %47 = arith.mulf %46, %1 : vector<8x128xf32>
    %cst_40 = arith.constant 1.000000e+00 : f32
    %48 = vector.broadcast %cst_40 : f32 to vector<12x8xf32>
    %cst_41 = arith.constant dense<0.000000e+00> : vector<12x128xf32>
    %49 = tpu.matmul %48, %47, %cst_41 {dimension_numbers = #tpu.dot_dimension_numbers<[1], [0], [0], [1], [0, 0, 1, 1], [], []>} : vector<12x8xf32>, vector<8x128xf32>, vector<12x128xf32> -> vector<12x128xf32>
    %cst_42 = arith.constant dense<0.000000e+00> : vector<12x128xf32>
    %50 = tpu.matmul %42, %0, %cst_42 {dimension_numbers = #tpu.dot_dimension_numbers<[1], [0], [0], [1], [0, 0, 1, 1], [], []>} : vector<12x16xf32>, vector<16x128xf32>, vector<12x128xf32> -> vector<12x128xf32>
    %51 = arith.addf %49, %50 : vector<12x128xf32>
    %cst_43 = arith.constant dense<0.000000e+00> : vector<12x128xf32>
    %52 = tpu.matmul %14, %43, %cst_43 {dimension_numbers = #tpu.dot_dimension_numbers<[1], [0], [0], [1], [0, 0, 1, 1], [], []>} : vector<12x8xf32>, vector<8x128xf32>, vector<12x128xf32> -> vector<12x128xf32>
    %53 = arith.addf %51, %52 : vector<12x128xf32>
    %cst_44 = arith.constant 2.000000e-01 : f32
    %54 = vector.broadcast %cst_44 : f32 to vector<12x128xf32>
    %55 = arith.mulf %54, %53 : vector<12x128xf32>
    %56 = arith.maximumf %53, %55 : vector<12x128xf32>
    %57 = vector.broadcast %44 : vector<1x128xf32> to vector<12x128xf32>
    %58 = arith.mulf %56, %57 : vector<12x128xf32>
    %cst_45 = arith.constant dense<0.000000e+00> : vector<12x16xf32>
    %59 = tpu.matmul %58, %2, %cst_45 {dimension_numbers = #tpu.dot_dimension_numbers<[1], [0], [0], [1], [0, 0, 1, 1], [], []>} : vector<12x128xf32>, vector<128x16xf32>, vector<12x16xf32> -> vector<12x16xf32>
    %cst_46 = arith.constant dense<0xFF800000> : vector<12xf32>
    %60 = vector.multi_reduction <maximumf>, %59, %cst_46 [1] : vector<12x16xf32> to vector<12xf32>
    %61 = vector.shape_cast %60 : vector<12xf32> to vector<12x1xf32>
    %62 = vector.broadcast %61 : vector<12x1xf32> to vector<12x16xf32>
    %63 = arith.subf %59, %62 : vector<12x16xf32>
    %64 = math.exp %63 : vector<12x16xf32>
    %cst_47 = arith.constant dense<0.000000e+00> : vector<12x16xf32>
    %65 = tpu.matmul %64, %5, %cst_47 {dimension_numbers = #tpu.dot_dimension_numbers<[1], [0], [0], [1], [0, 0, 1, 1], [], []>} : vector<12x16xf32>, vector<16x16xf32>, vector<12x16xf32> -> vector<12x16xf32>
    %66 = arith.divf %64, %65 : vector<12x16xf32>
    %cst_48 = arith.constant dense<0.000000e+00> : vector<16x16xf32>
    %67 = tpu.matmul %3, %41, %cst_48 {dimension_numbers = #tpu.dot_dimension_numbers<[1], [0], [0], [1], [0, 0, 1, 1], [], []>} : vector<16x8xf32>, vector<8x16xf32>, vector<16x16xf32> -> vector<16x16xf32>
    %68 = arith.mulf %67, %4 : vector<16x16xf32>
    %cst_49 = arith.constant dense<0.000000e+00> : vector<12x16xf32>
    %69 = tpu.matmul %66, %68, %cst_49 {dimension_numbers = #tpu.dot_dimension_numbers<[1], [0], [0], [1], [0, 0, 1, 1], [], []>} : vector<12x16xf32>, vector<16x16xf32>, vector<12x16xf32> -> vector<12x16xf32>
    %70 = vector.broadcast %45 : vector<1x16xf32> to vector<12x16xf32>
    %71 = arith.addf %69, %70 : vector<12x16xf32>
    %72 = vector.extract_strided_slice %39 {offsets = [0, 0], sizes = [12, 16], strides = [1, 1]} : vector<12x64xf32> to vector<12x16xf32>
    %73 = vector.extract_strided_slice %29 {offsets = [0, 16], sizes = [8, 16], strides = [1, 1]} : vector<8x48xf32> to vector<8x16xf32>
    %c8 = arith.constant 8 : index
    %c0_50 = arith.constant 0 : index
    %74 = vector.load %arg1[%c8, %c0_50] : memref<184x192xf32, #tpu.memory_space<vmem>>, vector<12x192xf32>
    %c144 = arith.constant 144 : index
    %c0_51 = arith.constant 0 : index
    %75 = vector.load %arg1[%c144, %c0_51] : memref<184x192xf32, #tpu.memory_space<vmem>>, vector<1x192xf32>
    %76 = vector.extract_strided_slice %40 {offsets = [0, 16], sizes = [1, 16], strides = [1, 1]} : vector<1x64xf32> to vector<1x16xf32>
    %cst_52 = arith.constant dense<0.000000e+00> : vector<12x192xf32>
    %77 = tpu.matmul %72, %6, %cst_52 {dimension_numbers = #tpu.dot_dimension_numbers<[1], [0], [0], [1], [0, 0, 1, 1], [], []>} : vector<12x16xf32>, vector<16x192xf32>, vector<12x192xf32> -> vector<12x192xf32>
    %78 = arith.mulf %77, %7 : vector<12x192xf32>
    %cst_53 = arith.constant 1.000000e+00 : f32
    %79 = vector.broadcast %cst_53 : f32 to vector<8x12xf32>
    %cst_54 = arith.constant dense<0.000000e+00> : vector<8x192xf32>
    %80 = tpu.matmul %79, %78, %cst_54 {dimension_numbers = #tpu.dot_dimension_numbers<[1], [0], [0], [1], [0, 0, 1, 1], [], []>} : vector<8x12xf32>, vector<12x192xf32>, vector<8x192xf32> -> vector<8x192xf32>
    %cst_55 = arith.constant dense<0.000000e+00> : vector<8x192xf32>
    %81 = tpu.matmul %73, %6, %cst_55 {dimension_numbers = #tpu.dot_dimension_numbers<[1], [0], [0], [1], [0, 0, 1, 1], [], []>} : vector<8x16xf32>, vector<16x192xf32>, vector<8x192xf32> -> vector<8x192xf32>
    %82 = arith.addf %80, %81 : vector<8x192xf32>
    %cst_56 = arith.constant dense<0.000000e+00> : vector<8x192xf32>
    %83 = tpu.matmul %15, %74, %cst_56 {dimension_numbers = #tpu.dot_dimension_numbers<[1], [0], [0], [1], [0, 0, 1, 1], [], []>} : vector<8x12xf32>, vector<12x192xf32>, vector<8x192xf32> -> vector<8x192xf32>
    %84 = arith.addf %82, %83 : vector<8x192xf32>
    %cst_57 = arith.constant 2.000000e-01 : f32
    %85 = vector.broadcast %cst_57 : f32 to vector<8x192xf32>
    %86 = arith.mulf %85, %84 : vector<8x192xf32>
    %87 = arith.maximumf %84, %86 : vector<8x192xf32>
    %88 = vector.broadcast %75 : vector<1x192xf32> to vector<8x192xf32>
    %89 = arith.mulf %87, %88 : vector<8x192xf32>
    %cst_58 = arith.constant dense<0.000000e+00> : vector<8x24xf32>
    %90 = tpu.matmul %89, %8, %cst_58 {dimension_numbers = #tpu.dot_dimension_numbers<[1], [0], [0], [1], [0, 0, 1, 1], [], []>} : vector<8x192xf32>, vector<192x24xf32>, vector<8x24xf32> -> vector<8x24xf32>
    %cst_59 = arith.constant dense<0xFF800000> : vector<8xf32>
    %91 = vector.multi_reduction <maximumf>, %90, %cst_59 [1] : vector<8x24xf32> to vector<8xf32>
    %92 = vector.shape_cast %91 : vector<8xf32> to vector<8x1xf32>
    %93 = vector.broadcast %92 : vector<8x1xf32> to vector<8x24xf32>
    %94 = arith.subf %90, %93 : vector<8x24xf32>
    %95 = math.exp %94 : vector<8x24xf32>
    %cst_60 = arith.constant dense<0.000000e+00> : vector<8x24xf32>
    %96 = tpu.matmul %95, %11, %cst_60 {dimension_numbers = #tpu.dot_dimension_numbers<[1], [0], [0], [1], [0, 0, 1, 1], [], []>} : vector<8x24xf32>, vector<24x24xf32>, vector<8x24xf32> -> vector<8x24xf32>
    %97 = arith.divf %95, %96 : vector<8x24xf32>
    %cst_61 = arith.constant dense<0.000000e+00> : vector<24x16xf32>
    %98 = tpu.matmul %9, %72, %cst_61 {dimension_numbers = #tpu.dot_dimension_numbers<[1], [0], [0], [1], [0, 0, 1, 1], [], []>} : vector<24x12xf32>, vector<12x16xf32>, vector<24x16xf32> -> vector<24x16xf32>
    %99 = arith.mulf %98, %10 : vector<24x16xf32>
    %cst_62 = arith.constant dense<0.000000e+00> : vector<8x16xf32>
    %100 = tpu.matmul %97, %99, %cst_62 {dimension_numbers = #tpu.dot_dimension_numbers<[1], [0], [0], [1], [0, 0, 1, 1], [], []>} : vector<8x24xf32>, vector<24x16xf32>, vector<8x16xf32> -> vector<8x16xf32>
    %101 = vector.broadcast %76 : vector<1x16xf32> to vector<8x16xf32>
    %102 = arith.addf %100, %101 : vector<8x16xf32>
    %103 = vector.extract_strided_slice %34 {offsets = [0, 0], sizes = [8, 16], strides = [1, 1]} : vector<8x48xf32> to vector<8x16xf32>
    %104 = vector.extract_strided_slice %39 {offsets = [0, 48], sizes = [12, 16], strides = [1, 1]} : vector<12x64xf32> to vector<12x16xf32>
    %c24 = arith.constant 24 : index
    %c0_63 = arith.constant 0 : index
    %105 = vector.load %arg1[%c24, %c0_63] : memref<184x192xf32, #tpu.memory_space<vmem>>, vector<8x128xf32>
    %c152 = arith.constant 152 : index
    %c0_64 = arith.constant 0 : index
    %106 = vector.load %arg1[%c152, %c0_64] : memref<184x192xf32, #tpu.memory_space<vmem>>, vector<1x128xf32>
    %107 = vector.extract_strided_slice %40 {offsets = [0, 32], sizes = [1, 16], strides = [1, 1]} : vector<1x64xf32> to vector<1x16xf32>
    %cst_65 = arith.constant dense<0.000000e+00> : vector<8x128xf32>
    %108 = tpu.matmul %103, %0, %cst_65 {dimension_numbers = #tpu.dot_dimension_numbers<[1], [0], [0], [1], [0, 0, 1, 1], [], []>} : vector<8x16xf32>, vector<16x128xf32>, vector<8x128xf32> -> vector<8x128xf32>
    %109 = arith.mulf %108, %1 : vector<8x128xf32>
    %cst_66 = arith.constant 1.000000e+00 : f32
    %110 = vector.broadcast %cst_66 : f32 to vector<12x8xf32>
    %cst_67 = arith.constant dense<0.000000e+00> : vector<12x128xf32>
    %111 = tpu.matmul %110, %109, %cst_67 {dimension_numbers = #tpu.dot_dimension_numbers<[1], [0], [0], [1], [0, 0, 1, 1], [], []>} : vector<12x8xf32>, vector<8x128xf32>, vector<12x128xf32> -> vector<12x128xf32>
    %cst_68 = arith.constant dense<0.000000e+00> : vector<12x128xf32>
    %112 = tpu.matmul %104, %0, %cst_68 {dimension_numbers = #tpu.dot_dimension_numbers<[1], [0], [0], [1], [0, 0, 1, 1], [], []>} : vector<12x16xf32>, vector<16x128xf32>, vector<12x128xf32> -> vector<12x128xf32>
    %113 = arith.addf %111, %112 : vector<12x128xf32>
    %cst_69 = arith.constant dense<0.000000e+00> : vector<12x128xf32>
    %114 = tpu.matmul %16, %105, %cst_69 {dimension_numbers = #tpu.dot_dimension_numbers<[1], [0], [0], [1], [0, 0, 1, 1], [], []>} : vector<12x8xf32>, vector<8x128xf32>, vector<12x128xf32> -> vector<12x128xf32>
    %115 = arith.addf %113, %114 : vector<12x128xf32>
    %cst_70 = arith.constant 2.000000e-01 : f32
    %116 = vector.broadcast %cst_70 : f32 to vector<12x128xf32>
    %117 = arith.mulf %116, %115 : vector<12x128xf32>
    %118 = arith.maximumf %115, %117 : vector<12x128xf32>
    %119 = vector.broadcast %106 : vector<1x128xf32> to vector<12x128xf32>
    %120 = arith.mulf %118, %119 : vector<12x128xf32>
    %cst_71 = arith.constant dense<0.000000e+00> : vector<12x16xf32>
    %121 = tpu.matmul %120, %2, %cst_71 {dimension_numbers = #tpu.dot_dimension_numbers<[1], [0], [0], [1], [0, 0, 1, 1], [], []>} : vector<12x128xf32>, vector<128x16xf32>, vector<12x16xf32> -> vector<12x16xf32>
    %cst_72 = arith.constant dense<0xFF800000> : vector<12xf32>
    %122 = vector.multi_reduction <maximumf>, %121, %cst_72 [1] : vector<12x16xf32> to vector<12xf32>
    %123 = vector.shape_cast %122 : vector<12xf32> to vector<12x1xf32>
    %124 = vector.broadcast %123 : vector<12x1xf32> to vector<12x16xf32>
    %125 = arith.subf %121, %124 : vector<12x16xf32>
    %126 = math.exp %125 : vector<12x16xf32>
    %cst_73 = arith.constant dense<0.000000e+00> : vector<12x16xf32>
    %127 = tpu.matmul %126, %5, %cst_73 {dimension_numbers = #tpu.dot_dimension_numbers<[1], [0], [0], [1], [0, 0, 1, 1], [], []>} : vector<12x16xf32>, vector<16x16xf32>, vector<12x16xf32> -> vector<12x16xf32>
    %128 = arith.divf %126, %127 : vector<12x16xf32>
    %cst_74 = arith.constant dense<0.000000e+00> : vector<16x16xf32>
    %129 = tpu.matmul %3, %103, %cst_74 {dimension_numbers = #tpu.dot_dimension_numbers<[1], [0], [0], [1], [0, 0, 1, 1], [], []>} : vector<16x8xf32>, vector<8x16xf32>, vector<16x16xf32> -> vector<16x16xf32>
    %130 = arith.mulf %129, %4 : vector<16x16xf32>
    %cst_75 = arith.constant dense<0.000000e+00> : vector<12x16xf32>
    %131 = tpu.matmul %128, %130, %cst_75 {dimension_numbers = #tpu.dot_dimension_numbers<[1], [0], [0], [1], [0, 0, 1, 1], [], []>} : vector<12x16xf32>, vector<16x16xf32>, vector<12x16xf32> -> vector<12x16xf32>
    %132 = vector.broadcast %107 : vector<1x16xf32> to vector<12x16xf32>
    %133 = arith.addf %131, %132 : vector<12x16xf32>
    %134 = vector.extract_strided_slice %39 {offsets = [0, 16], sizes = [12, 16], strides = [1, 1]} : vector<12x64xf32> to vector<12x16xf32>
    %135 = vector.extract_strided_slice %34 {offsets = [0, 16], sizes = [8, 16], strides = [1, 1]} : vector<8x48xf32> to vector<8x16xf32>
    %c32 = arith.constant 32 : index
    %c0_76 = arith.constant 0 : index
    %136 = vector.load %arg1[%c32, %c0_76] : memref<184x192xf32, #tpu.memory_space<vmem>>, vector<12x192xf32>
    %c160 = arith.constant 160 : index
    %c0_77 = arith.constant 0 : index
    %137 = vector.load %arg1[%c160, %c0_77] : memref<184x192xf32, #tpu.memory_space<vmem>>, vector<1x192xf32>
    %138 = vector.extract_strided_slice %40 {offsets = [0, 48], sizes = [1, 16], strides = [1, 1]} : vector<1x64xf32> to vector<1x16xf32>
    %cst_78 = arith.constant dense<0.000000e+00> : vector<12x192xf32>
    %139 = tpu.matmul %134, %6, %cst_78 {dimension_numbers = #tpu.dot_dimension_numbers<[1], [0], [0], [1], [0, 0, 1, 1], [], []>} : vector<12x16xf32>, vector<16x192xf32>, vector<12x192xf32> -> vector<12x192xf32>
    %140 = arith.mulf %139, %7 : vector<12x192xf32>
    %cst_79 = arith.constant 1.000000e+00 : f32
    %141 = vector.broadcast %cst_79 : f32 to vector<8x12xf32>
    %cst_80 = arith.constant dense<0.000000e+00> : vector<8x192xf32>
    %142 = tpu.matmul %141, %140, %cst_80 {dimension_numbers = #tpu.dot_dimension_numbers<[1], [0], [0], [1], [0, 0, 1, 1], [], []>} : vector<8x12xf32>, vector<12x192xf32>, vector<8x192xf32> -> vector<8x192xf32>
    %cst_81 = arith.constant dense<0.000000e+00> : vector<8x192xf32>
    %143 = tpu.matmul %135, %6, %cst_81 {dimension_numbers = #tpu.dot_dimension_numbers<[1], [0], [0], [1], [0, 0, 1, 1], [], []>} : vector<8x16xf32>, vector<16x192xf32>, vector<8x192xf32> -> vector<8x192xf32>
    %144 = arith.addf %142, %143 : vector<8x192xf32>
    %cst_82 = arith.constant dense<0.000000e+00> : vector<8x192xf32>
    %145 = tpu.matmul %17, %136, %cst_82 {dimension_numbers = #tpu.dot_dimension_numbers<[1], [0], [0], [1], [0, 0, 1, 1], [], []>} : vector<8x12xf32>, vector<12x192xf32>, vector<8x192xf32> -> vector<8x192xf32>
    %146 = arith.addf %144, %145 : vector<8x192xf32>
    %cst_83 = arith.constant 2.000000e-01 : f32
    %147 = vector.broadcast %cst_83 : f32 to vector<8x192xf32>
    %148 = arith.mulf %147, %146 : vector<8x192xf32>
    %149 = arith.maximumf %146, %148 : vector<8x192xf32>
    %150 = vector.broadcast %137 : vector<1x192xf32> to vector<8x192xf32>
    %151 = arith.mulf %149, %150 : vector<8x192xf32>
    %cst_84 = arith.constant dense<0.000000e+00> : vector<8x24xf32>
    %152 = tpu.matmul %151, %8, %cst_84 {dimension_numbers = #tpu.dot_dimension_numbers<[1], [0], [0], [1], [0, 0, 1, 1], [], []>} : vector<8x192xf32>, vector<192x24xf32>, vector<8x24xf32> -> vector<8x24xf32>
    %cst_85 = arith.constant dense<0xFF800000> : vector<8xf32>
    %153 = vector.multi_reduction <maximumf>, %152, %cst_85 [1] : vector<8x24xf32> to vector<8xf32>
    %154 = vector.shape_cast %153 : vector<8xf32> to vector<8x1xf32>
    %155 = vector.broadcast %154 : vector<8x1xf32> to vector<8x24xf32>
    %156 = arith.subf %152, %155 : vector<8x24xf32>
    %157 = math.exp %156 : vector<8x24xf32>
    %cst_86 = arith.constant dense<0.000000e+00> : vector<8x24xf32>
    %158 = tpu.matmul %157, %11, %cst_86 {dimension_numbers = #tpu.dot_dimension_numbers<[1], [0], [0], [1], [0, 0, 1, 1], [], []>} : vector<8x24xf32>, vector<24x24xf32>, vector<8x24xf32> -> vector<8x24xf32>
    %159 = arith.divf %157, %158 : vector<8x24xf32>
    %cst_87 = arith.constant dense<0.000000e+00> : vector<24x16xf32>
    %160 = tpu.matmul %9, %134, %cst_87 {dimension_numbers = #tpu.dot_dimension_numbers<[1], [0], [0], [1], [0, 0, 1, 1], [], []>} : vector<24x12xf32>, vector<12x16xf32>, vector<24x16xf32> -> vector<24x16xf32>
    %161 = arith.mulf %160, %10 : vector<24x16xf32>
    %cst_88 = arith.constant dense<0.000000e+00> : vector<8x16xf32>
    %162 = tpu.matmul %159, %161, %cst_88 {dimension_numbers = #tpu.dot_dimension_numbers<[1], [0], [0], [1], [0, 0, 1, 1], [], []>} : vector<8x24xf32>, vector<24x16xf32>, vector<8x16xf32> -> vector<8x16xf32>
    %163 = vector.broadcast %138 : vector<1x16xf32> to vector<8x16xf32>
    %164 = arith.addf %162, %163 : vector<8x16xf32>
    %165 = arith.addf %71, %133 : vector<12x16xf32>
    %cst_89 = arith.constant 0.000000e+00 : f32
    %166 = vector.broadcast %cst_89 : f32 to vector<12x16xf32>
    %167 = arith.maximumf %165, %166 : vector<12x16xf32>
    %168 = vector.extract_strided_slice %29 {offsets = [0, 32], sizes = [8, 16], strides = [1, 1]} : vector<8x48xf32> to vector<8x16xf32>
    %169 = arith.addf %102, %168 : vector<8x16xf32>
    %cst_90 = arith.constant 0.000000e+00 : f32
    %170 = vector.broadcast %cst_90 : f32 to vector<8x16xf32>
    %171 = arith.maximumf %169, %170 : vector<8x16xf32>
    %172 = vector.extract_strided_slice %34 {offsets = [0, 32], sizes = [8, 16], strides = [1, 1]} : vector<8x48xf32> to vector<8x16xf32>
    %173 = arith.addf %164, %172 : vector<8x16xf32>
    %cst_91 = arith.constant 0.000000e+00 : f32
    %174 = vector.broadcast %cst_91 : f32 to vector<8x16xf32>
    %175 = arith.maximumf %173, %174 : vector<8x16xf32>
    %c144_92 = arith.constant 144 : index
    %c0_93 = arith.constant 0 : index
    %176 = vector.load %arg2[%c144_92, %c0_93] : memref<712x64xf32, #tpu.memory_space<vmem>>, vector<16x24xf32>
    %cst_94 = arith.constant dense<0.000000e+00> : vector<8x24xf32>
    %177 = tpu.matmul %171, %176, %cst_94 {dimension_numbers = #tpu.dot_dimension_numbers<[1], [0], [0], [1], [0, 0, 1, 1], [], []>} : vector<8x16xf32>, vector<16x24xf32>, vector<8x24xf32> -> vector<8x24xf32>
    %c160_95 = arith.constant 160 : index
    %c0_96 = arith.constant 0 : index
    %178 = vector.load %arg2[%c160_95, %c0_96] : memref<712x64xf32, #tpu.memory_space<vmem>>, vector<1x24xf32>
    %179 = vector.broadcast %178 : vector<1x24xf32> to vector<8x24xf32>
    %180 = arith.addf %177, %179 : vector<8x24xf32>
    %c168 = arith.constant 168 : index
    %c0_97 = arith.constant 0 : index
    %181 = vector.load %arg2[%c168, %c0_97] : memref<712x64xf32, #tpu.memory_space<vmem>>, vector<16x24xf32>
    %cst_98 = arith.constant dense<0.000000e+00> : vector<8x24xf32>
    %182 = tpu.matmul %175, %181, %cst_98 {dimension_numbers = #tpu.dot_dimension_numbers<[1], [0], [0], [1], [0, 0, 1, 1], [], []>} : vector<8x16xf32>, vector<16x24xf32>, vector<8x24xf32> -> vector<8x24xf32>
    %c184 = arith.constant 184 : index
    %c0_99 = arith.constant 0 : index
    %183 = vector.load %arg2[%c184, %c0_99] : memref<712x64xf32, #tpu.memory_space<vmem>>, vector<1x24xf32>
    %184 = vector.broadcast %183 : vector<1x24xf32> to vector<8x24xf32>
    %185 = arith.addf %182, %184 : vector<8x24xf32>
    %c192 = arith.constant 192 : index
    %c0_100 = arith.constant 0 : index
    %186 = vector.load %arg2[%c192, %c0_100] : memref<712x64xf32, #tpu.memory_space<vmem>>, vector<16x32xf32>
    %cst_101 = arith.constant dense<0.000000e+00> : vector<12x32xf32>
    %187 = tpu.matmul %167, %186, %cst_101 {dimension_numbers = #tpu.dot_dimension_numbers<[1], [0], [0], [1], [0, 0, 1, 1], [], []>} : vector<12x16xf32>, vector<16x32xf32>, vector<12x32xf32> -> vector<12x32xf32>
    %c208 = arith.constant 208 : index
    %c0_102 = arith.constant 0 : index
    %188 = vector.load %arg2[%c208, %c0_102] : memref<712x64xf32, #tpu.memory_space<vmem>>, vector<1x32xf32>
    %189 = vector.broadcast %188 : vector<1x32xf32> to vector<12x32xf32>
    %190 = arith.addf %187, %189 : vector<12x32xf32>
    %c216 = arith.constant 216 : index
    %c0_103 = arith.constant 0 : index
    %191 = vector.load %arg2[%c216, %c0_103] : memref<712x64xf32, #tpu.memory_space<vmem>>, vector<1x16xf32>
    %192 = vector.extract_strided_slice %190 {offsets = [0, 0], sizes = [12, 16], strides = [1, 1]} : vector<12x32xf32> to vector<12x16xf32>
    %193 = vector.extract_strided_slice %180 {offsets = [0, 0], sizes = [8, 16], strides = [1, 1]} : vector<8x24xf32> to vector<8x16xf32>
    %c48 = arith.constant 48 : index
    %c0_104 = arith.constant 0 : index
    %194 = vector.load %arg1[%c48, %c0_104] : memref<184x192xf32, #tpu.memory_space<vmem>>, vector<12x192xf32>
    %c168_105 = arith.constant 168 : index
    %c0_106 = arith.constant 0 : index
    %195 = vector.load %arg1[%c168_105, %c0_106] : memref<184x192xf32, #tpu.memory_space<vmem>>, vector<1x192xf32>
    %196 = vector.extract_strided_slice %191 {offsets = [0, 0], sizes = [1, 8], strides = [1, 1]} : vector<1x16xf32> to vector<1x8xf32>
    %cst_107 = arith.constant dense<0.000000e+00> : vector<12x192xf32>
    %197 = tpu.matmul %192, %6, %cst_107 {dimension_numbers = #tpu.dot_dimension_numbers<[1], [0], [0], [1], [0, 0, 1, 1], [], []>} : vector<12x16xf32>, vector<16x192xf32>, vector<12x192xf32> -> vector<12x192xf32>
    %198 = arith.mulf %197, %7 : vector<12x192xf32>
    %cst_108 = arith.constant 1.000000e+00 : f32
    %199 = vector.broadcast %cst_108 : f32 to vector<8x12xf32>
    %cst_109 = arith.constant dense<0.000000e+00> : vector<8x192xf32>
    %200 = tpu.matmul %199, %198, %cst_109 {dimension_numbers = #tpu.dot_dimension_numbers<[1], [0], [0], [1], [0, 0, 1, 1], [], []>} : vector<8x12xf32>, vector<12x192xf32>, vector<8x192xf32> -> vector<8x192xf32>
    %cst_110 = arith.constant dense<0.000000e+00> : vector<8x192xf32>
    %201 = tpu.matmul %193, %6, %cst_110 {dimension_numbers = #tpu.dot_dimension_numbers<[1], [0], [0], [1], [0, 0, 1, 1], [], []>} : vector<8x16xf32>, vector<16x192xf32>, vector<8x192xf32> -> vector<8x192xf32>
    %202 = arith.addf %200, %201 : vector<8x192xf32>
    %cst_111 = arith.constant dense<0.000000e+00> : vector<8x192xf32>
    %203 = tpu.matmul %15, %194, %cst_111 {dimension_numbers = #tpu.dot_dimension_numbers<[1], [0], [0], [1], [0, 0, 1, 1], [], []>} : vector<8x12xf32>, vector<12x192xf32>, vector<8x192xf32> -> vector<8x192xf32>
    %204 = arith.addf %202, %203 : vector<8x192xf32>
    %cst_112 = arith.constant 2.000000e-01 : f32
    %205 = vector.broadcast %cst_112 : f32 to vector<8x192xf32>
    %206 = arith.mulf %205, %204 : vector<8x192xf32>
    %207 = arith.maximumf %204, %206 : vector<8x192xf32>
    %208 = vector.broadcast %195 : vector<1x192xf32> to vector<8x192xf32>
    %209 = arith.mulf %207, %208 : vector<8x192xf32>
    %cst_113 = arith.constant dense<0.000000e+00> : vector<8x24xf32>
    %210 = tpu.matmul %209, %8, %cst_113 {dimension_numbers = #tpu.dot_dimension_numbers<[1], [0], [0], [1], [0, 0, 1, 1], [], []>} : vector<8x192xf32>, vector<192x24xf32>, vector<8x24xf32> -> vector<8x24xf32>
    %cst_114 = arith.constant dense<0xFF800000> : vector<8xf32>
    %211 = vector.multi_reduction <maximumf>, %210, %cst_114 [1] : vector<8x24xf32> to vector<8xf32>
    %212 = vector.shape_cast %211 : vector<8xf32> to vector<8x1xf32>
    %213 = vector.broadcast %212 : vector<8x1xf32> to vector<8x24xf32>
    %214 = arith.subf %210, %213 : vector<8x24xf32>
    %215 = math.exp %214 : vector<8x24xf32>
    %cst_115 = arith.constant dense<0.000000e+00> : vector<8x24xf32>
    %216 = tpu.matmul %215, %11, %cst_115 {dimension_numbers = #tpu.dot_dimension_numbers<[1], [0], [0], [1], [0, 0, 1, 1], [], []>} : vector<8x24xf32>, vector<24x24xf32>, vector<8x24xf32> -> vector<8x24xf32>
    %217 = arith.divf %215, %216 : vector<8x24xf32>
    %cst_116 = arith.constant dense<0.000000e+00> : vector<24x16xf32>
    %218 = tpu.matmul %9, %192, %cst_116 {dimension_numbers = #tpu.dot_dimension_numbers<[1], [0], [0], [1], [0, 0, 1, 1], [], []>} : vector<24x12xf32>, vector<12x16xf32>, vector<24x16xf32> -> vector<24x16xf32>
    %219 = arith.mulf %218, %10 : vector<24x16xf32>
    %cst_117 = arith.constant dense<0.000000e+00> : vector<8x16xf32>
    %220 = tpu.matmul %217, %219, %cst_117 {dimension_numbers = #tpu.dot_dimension_numbers<[1], [0], [0], [1], [0, 0, 1, 1], [], []>} : vector<8x24xf32>, vector<24x16xf32>, vector<8x16xf32> -> vector<8x16xf32>
    %221 = vector.extract_strided_slice %220 {offsets = [0, 0], sizes = [8, 8], strides = [1, 1]} : vector<8x16xf32> to vector<8x8xf32>
    %222 = vector.extract_strided_slice %220 {offsets = [0, 8], sizes = [8, 8], strides = [1, 1]} : vector<8x16xf32> to vector<8x8xf32>
    %223 = arith.addf %221, %222 : vector<8x8xf32>
    %cst_118 = arith.constant 5.000000e-01 : f32
    %224 = vector.broadcast %cst_118 : f32 to vector<8x8xf32>
    %225 = arith.mulf %223, %224 : vector<8x8xf32>
    %226 = vector.broadcast %196 : vector<1x8xf32> to vector<8x8xf32>
    %227 = arith.addf %225, %226 : vector<8x8xf32>
    %228 = vector.extract_strided_slice %190 {offsets = [0, 16], sizes = [12, 16], strides = [1, 1]} : vector<12x32xf32> to vector<12x16xf32>
    %229 = vector.extract_strided_slice %185 {offsets = [0, 0], sizes = [8, 16], strides = [1, 1]} : vector<8x24xf32> to vector<8x16xf32>
    %c64_119 = arith.constant 64 : index
    %c0_120 = arith.constant 0 : index
    %230 = vector.load %arg1[%c64_119, %c0_120] : memref<184x192xf32, #tpu.memory_space<vmem>>, vector<12x192xf32>
    %c176 = arith.constant 176 : index
    %c0_121 = arith.constant 0 : index
    %231 = vector.load %arg1[%c176, %c0_121] : memref<184x192xf32, #tpu.memory_space<vmem>>, vector<1x192xf32>
    %232 = vector.extract_strided_slice %191 {offsets = [0, 8], sizes = [1, 8], strides = [1, 1]} : vector<1x16xf32> to vector<1x8xf32>
    %cst_122 = arith.constant dense<0.000000e+00> : vector<12x192xf32>
    %233 = tpu.matmul %228, %6, %cst_122 {dimension_numbers = #tpu.dot_dimension_numbers<[1], [0], [0], [1], [0, 0, 1, 1], [], []>} : vector<12x16xf32>, vector<16x192xf32>, vector<12x192xf32> -> vector<12x192xf32>
    %234 = arith.mulf %233, %7 : vector<12x192xf32>
    %cst_123 = arith.constant 1.000000e+00 : f32
    %235 = vector.broadcast %cst_123 : f32 to vector<8x12xf32>
    %cst_124 = arith.constant dense<0.000000e+00> : vector<8x192xf32>
    %236 = tpu.matmul %235, %234, %cst_124 {dimension_numbers = #tpu.dot_dimension_numbers<[1], [0], [0], [1], [0, 0, 1, 1], [], []>} : vector<8x12xf32>, vector<12x192xf32>, vector<8x192xf32> -> vector<8x192xf32>
    %cst_125 = arith.constant dense<0.000000e+00> : vector<8x192xf32>
    %237 = tpu.matmul %229, %6, %cst_125 {dimension_numbers = #tpu.dot_dimension_numbers<[1], [0], [0], [1], [0, 0, 1, 1], [], []>} : vector<8x16xf32>, vector<16x192xf32>, vector<8x192xf32> -> vector<8x192xf32>
    %238 = arith.addf %236, %237 : vector<8x192xf32>
    %cst_126 = arith.constant dense<0.000000e+00> : vector<8x192xf32>
    %239 = tpu.matmul %17, %230, %cst_126 {dimension_numbers = #tpu.dot_dimension_numbers<[1], [0], [0], [1], [0, 0, 1, 1], [], []>} : vector<8x12xf32>, vector<12x192xf32>, vector<8x192xf32> -> vector<8x192xf32>
    %240 = arith.addf %238, %239 : vector<8x192xf32>
    %cst_127 = arith.constant 2.000000e-01 : f32
    %241 = vector.broadcast %cst_127 : f32 to vector<8x192xf32>
    %242 = arith.mulf %241, %240 : vector<8x192xf32>
    %243 = arith.maximumf %240, %242 : vector<8x192xf32>
    %244 = vector.broadcast %231 : vector<1x192xf32> to vector<8x192xf32>
    %245 = arith.mulf %243, %244 : vector<8x192xf32>
    %cst_128 = arith.constant dense<0.000000e+00> : vector<8x24xf32>
    %246 = tpu.matmul %245, %8, %cst_128 {dimension_numbers = #tpu.dot_dimension_numbers<[1], [0], [0], [1], [0, 0, 1, 1], [], []>} : vector<8x192xf32>, vector<192x24xf32>, vector<8x24xf32> -> vector<8x24xf32>
    %cst_129 = arith.constant dense<0xFF800000> : vector<8xf32>
    %247 = vector.multi_reduction <maximumf>, %246, %cst_129 [1] : vector<8x24xf32> to vector<8xf32>
    %248 = vector.shape_cast %247 : vector<8xf32> to vector<8x1xf32>
    %249 = vector.broadcast %248 : vector<8x1xf32> to vector<8x24xf32>
    %250 = arith.subf %246, %249 : vector<8x24xf32>
    %251 = math.exp %250 : vector<8x24xf32>
    %cst_130 = arith.constant dense<0.000000e+00> : vector<8x24xf32>
    %252 = tpu.matmul %251, %11, %cst_130 {dimension_numbers = #tpu.dot_dimension_numbers<[1], [0], [0], [1], [0, 0, 1, 1], [], []>} : vector<8x24xf32>, vector<24x24xf32>, vector<8x24xf32> -> vector<8x24xf32>
    %253 = arith.divf %251, %252 : vector<8x24xf32>
    %cst_131 = arith.constant dense<0.000000e+00> : vector<24x16xf32>
    %254 = tpu.matmul %9, %228, %cst_131 {dimension_numbers = #tpu.dot_dimension_numbers<[1], [0], [0], [1], [0, 0, 1, 1], [], []>} : vector<24x12xf32>, vector<12x16xf32>, vector<24x16xf32> -> vector<24x16xf32>
    %255 = arith.mulf %254, %10 : vector<24x16xf32>
    %cst_132 = arith.constant dense<0.000000e+00> : vector<8x16xf32>
    %256 = tpu.matmul %253, %255, %cst_132 {dimension_numbers = #tpu.dot_dimension_numbers<[1], [0], [0], [1], [0, 0, 1, 1], [], []>} : vector<8x24xf32>, vector<24x16xf32>, vector<8x16xf32> -> vector<8x16xf32>
    %257 = vector.extract_strided_slice %256 {offsets = [0, 0], sizes = [8, 8], strides = [1, 1]} : vector<8x16xf32> to vector<8x8xf32>
    %258 = vector.extract_strided_slice %256 {offsets = [0, 8], sizes = [8, 8], strides = [1, 1]} : vector<8x16xf32> to vector<8x8xf32>
    %259 = arith.addf %257, %258 : vector<8x8xf32>
    %cst_133 = arith.constant 5.000000e-01 : f32
    %260 = vector.broadcast %cst_133 : f32 to vector<8x8xf32>
    %261 = arith.mulf %259, %260 : vector<8x8xf32>
    %262 = vector.broadcast %232 : vector<1x8xf32> to vector<8x8xf32>
    %263 = arith.addf %261, %262 : vector<8x8xf32>
    %264 = vector.extract_strided_slice %180 {offsets = [0, 16], sizes = [8, 8], strides = [1, 1]} : vector<8x24xf32> to vector<8x8xf32>
    %265 = arith.addf %227, %264 : vector<8x8xf32>
    %cst_134 = arith.constant 0.000000e+00 : f32
    %266 = vector.broadcast %cst_134 : f32 to vector<8x8xf32>
    %267 = arith.maximumf %265, %266 : vector<8x8xf32>
    %268 = vector.extract_strided_slice %185 {offsets = [0, 16], sizes = [8, 8], strides = [1, 1]} : vector<8x24xf32> to vector<8x8xf32>
    %269 = arith.addf %263, %268 : vector<8x8xf32>
    %cst_135 = arith.constant 0.000000e+00 : f32
    %270 = vector.broadcast %cst_135 : f32 to vector<8x8xf32>
    %271 = arith.maximumf %269, %270 : vector<8x8xf32>
    %c664 = arith.constant 664 : index
    %c0_136 = arith.constant 0 : index
    %272 = vector.load %arg2[%c664, %c0_136] : memref<712x64xf32, #tpu.memory_space<vmem>>, vector<8x16xf32>
    %cst_137 = arith.constant dense<0.000000e+00> : vector<8x16xf32>
    %273 = tpu.matmul %267, %272, %cst_137 {dimension_numbers = #tpu.dot_dimension_numbers<[1], [0], [0], [1], [0, 0, 1, 1], [], []>} : vector<8x8xf32>, vector<8x16xf32>, vector<8x16xf32> -> vector<8x16xf32>
    %c672 = arith.constant 672 : index
    %c0_138 = arith.constant 0 : index
    %274 = vector.load %arg2[%c672, %c0_138] : memref<712x64xf32, #tpu.memory_space<vmem>>, vector<8x16xf32>
    %cst_139 = arith.constant dense<0.000000e+00> : vector<8x16xf32>
    %275 = tpu.matmul %271, %274, %cst_139 {dimension_numbers = #tpu.dot_dimension_numbers<[1], [0], [0], [1], [0, 0, 1, 1], [], []>} : vector<8x8xf32>, vector<8x16xf32>, vector<8x16xf32> -> vector<8x16xf32>
    %276 = arith.addf %273, %275 : vector<8x16xf32>
    %c680 = arith.constant 680 : index
    %c0_140 = arith.constant 0 : index
    %277 = vector.load %arg2[%c680, %c0_140] : memref<712x64xf32, #tpu.memory_space<vmem>>, vector<1x16xf32>
    %278 = vector.broadcast %277 : vector<1x16xf32> to vector<8x16xf32>
    %279 = arith.addf %276, %278 : vector<8x16xf32>
    %cst_141 = arith.constant 0.000000e+00 : f32
    %280 = vector.broadcast %cst_141 : f32 to vector<8x16xf32>
    %281 = arith.maximumf %279, %280 : vector<8x16xf32>
    %c688 = arith.constant 688 : index
    %c0_142 = arith.constant 0 : index
    %282 = vector.load %arg2[%c688, %c0_142] : memref<712x64xf32, #tpu.memory_space<vmem>>, vector<16x4xf32>
    %cst_143 = arith.constant dense<0.000000e+00> : vector<8x4xf32>
    %283 = tpu.matmul %281, %282, %cst_143 {dimension_numbers = #tpu.dot_dimension_numbers<[1], [0], [0], [1], [0, 0, 1, 1], [], []>} : vector<8x16xf32>, vector<16x4xf32>, vector<8x4xf32> -> vector<8x4xf32>
    %c704 = arith.constant 704 : index
    %c0_144 = arith.constant 0 : index
    %284 = vector.load %arg2[%c704, %c0_144] : memref<712x64xf32, #tpu.memory_space<vmem>>, vector<1x4xf32>
    %285 = vector.broadcast %284 : vector<1x4xf32> to vector<8x4xf32>
    %286 = arith.addf %283, %285 : vector<8x4xf32>
    %c0_145 = arith.constant 0 : index
    %c0_146 = arith.constant 0 : index
    %287 = vector.load %arg3[%c0_145, %c0_146] : memref<8x4xf32, #tpu.memory_space<vmem>>, vector<8x4xf32>
    tpu.vector_store %arg3[%c0_145, %c0_146], %286 {strides = array<i32>} : memref<8x4xf32, #tpu.memory_space<vmem>>, vector<8x4xf32>,
    return
  }
}

</mosaic_0001>

<bundles_post_ra>
// kernel: birgat_forward.1
= control target key start
LH: loop header
LB: loop body
LE: loop exit
PB: predicated region body
PF: predicated region fallthrough
CT: control target
= control target key end

     0   :  { %v6052_v0 = vmov 0.0|0.0   ;;  %vm6053_vm0 = vmmov 0   ;;  %v6054_v4 = vmov 0.0   ;;  %vm94_vm1 = vcmask 457728   ;;  %s6055_s7 = smov 72   ;;  %s6056_s17 = smov 112   ;;  %s7182_s2 = inlined_call_operand.vmem [shape: f32[712,64], index: 2, kind: input, shape index: {}]   ;;  %s7183_s0 = inlined_call_operand.vmem [shape: f32[12,112], index: 0, kind: input, shape index: {}]   ;;  %s7184_s1 = inlined_call_operand.vmem [shape: f32[184,192], index: 1, kind: input, shape index: {}]   ;;  %s7185_s3 = inlined_call_operand.vmem [shape: f32[8,4], index: 3, kind: output, shape index: {}]  }
   0x1   :  { %5576 = vmatprep.subr.bf16.mxu0 %v6052_v0  ;;  %v82_v1 = vld [vmem:[%s7182_s2] sm:$0xff]  ;;  %v83_v2 = vld [vmem:[%s7182_s2 + $0x8] sm:$0xff]  ;;  %v84_v3 = vld [vmem:[%s7182_s2 + $0x10] sm:$0xff]  ;;  %5234 = vmatprep.mubr.msk.f32.mxu0 %vm6053_vm0, %v6054_v4  ;;  %vm175_vm2 = vcmask 130048   ;;  %s6057_s18 = smov 56   ;;  %vm583_vm3 = vcmask 64512  }
   0x2   :  { %v5577_v5 = vpack.c.bf16 %v83_v2, %v82_v1  ;;  %v85_v6 = vld [vmem:[%s7182_s2 + $0x18] sm:$0xff]  ;;  %5585 = vmatprep.subr.bf16.mxu1 %v6052_v0  ;;  %5241 = vmatprep.mubr.msk.f32.mxu1 %vm6053_vm0, %v6054_v4  ;;  %v86_v8 = vld [vmem:[%s7182_s2 + $0x20] sm:$0xff]  ;;  %v87_v9 = vld [vmem:[%s7182_s2 + $0x28] sm:$0xff]  ;;  %v6058_v37 = vmov 1.0   ;;  %s6059_s4 = smov 96   ;;  %vm831_vm4 = vcmask 125952  }
   0x3   :  { %v5580_v7 = vpack.c.bf16 %v85_v6, %v84_v3  ;;  %v5583_v10 = vpack.c.bf16 %v87_v9, %v86_v8  ;;  %v88_v11 = vld [vmem:[%s7182_s2 + $0x30] sm:$0xff]  ;;  %v6119_v12 = vld [vmem:[%s7183_s0] sm:$0xff]  ;;  %v169_v14 = vld [vmem:[%s7182_s2 + $0x48] sm:$0xff]  ;;  %s6060_s16 = smov 80   ;;  %s6061_s22 = smov 48   ;;  %vm1263_vm5 = vcmask 1043456  }
   0x4   :  { %5578 = vmatpush3.bf16.msra.mxu0 %v5577_v5  ;;  %v168_v13 = vld [vmem:[%s7182_s2 + $0x40] sm:$0xff]  ;;  %v6132_v16 = vld [vmem:[%s7183_s0 + $0x8] sm:$0xf]  ;;  %v249_v17 = vld [vmem:[%s7182_s2 + $0x58] sm:$0xff]  ;;  %vm6062_vm6 = vmmov 1   ;;  %vm1260_vm8 = vcmask 97280  }
   0x5   :  { %5579 = vmatprep.subr.bf16.mxu0 %v6052_v0  ;;  %v5586_v15 = vpack.c.bf16 %v169_v14, %v168_v13  ;;  %340 = vrot.lane.b32.xlu1 %v6132_v16, %s6055_s7  ;;  %v250_v18 = vld [vmem:[%s7182_s2 + $0x60] sm:$0xff]  ;;  %v4932_v19 = vld [vmem:[%s7182_s2 + $0x38] ss:$0 sm:$0xff]  ;;  %v330_v20 = vld [vmem:[%s7182_s2 + $0x70] sm:$0xff]  ;;  %vm1441_vm9 = vcmask 523264   ;;  %vm1515_vm10 = vcmask 195584  }
   0x6   :  { %v331_v21 = vld [vmem:[%s7182_s2 + $0x78] sm:$0xff]  ;;  %v5589_v23 = vpack.c.bf16 %v250_v18, %v249_v17  ;;  %v14_v28 = vld [vmem:[%s7184_s1 + $0xa0] sm:$0xff]  ;;  %v15_v29 = vld [vmem:[%s7184_s1 + $0xb0] sm:$0xff]  ;;  %s6063_s14 = smov 36   ;;  %s6064_s28 = smov 28   ;;  %vm4926_vm11 = vcmask 31744  }
   0x7   :  { %5587 = vmatpush3.bf16.msra.mxu1 %v5586_v15  ;;  %v5591_v26 = vpack.c.bf16 %v331_v21, %v330_v20  ;;  %v6165_v31 = vpack.c.bf16 %v15_v29, %v14_v28  ;;  %v4934_v33 = vld [vmem:[%s7182_s2 + $0x50] ss:$0 sm:$0xff]  ;;  %v17_v39 = vld [vmem:[%s7182_s2 + $0xe0] sm:$0xff]  ;;  %v18_v40 = vld [vmem:[%s7182_s2 + $0xe8] sm:$0xff]  ;;  %s6065_s12 = smov 120  }
   0x8   :  { %5581 = vmatpush3.bf16.msra.mxu0 %v5580_v7  ;;  %5588 = vmatprep.subr.bf16.mxu1 %v6052_v0  ;;  %v6191_v42 = vpack.c.bf16 %v18_v40, %v17_v39  ;;  %v4938_v43 = vld [vmem:[%s7182_s2 + $0x80] ss:$0 sm:$0xff]  ;;  %v37_v50 = vld [vmem:[%s7182_s2 + $0x270] sm:$0xff]  ;;  %v38_v51 = vld [vmem:[%s7182_s2 + $0x278] sm:$0xff] }
   0x9   :  { %5582 = vmatprep.subr.bf16.mxu0 %v6052_v0  ;;  %v6208_v48 = vld [vmem:[%s7184_s1 + $0xe0] sm:$0xff]  ;;  %v6220_v55 = vpack.c.bf16 %v38_v51, %v37_v50  ;;  %v19_v59 = vld [vmem:[%s7182_s2 + $0xf0] sm:$0xff]  ;;  %v20_v60 = vld [vmem:[%s7182_s2 + $0xf8] sm:$0xff] }
   0xa   :  { %v422_v54 = vld [vmem:[%s7184_s1] sm:$0xff]  ;;  %v6236_v61 = vpack.c.bf16 %v20_v60, %v19_v59  ;;  %v22_v1 = vld [vmem:[%s7182_s2 + $0x108] sm:$0xff]  ;;  %v23_v3 = vld [vmem:[%s7182_s2 + $0x110] sm:$0xff] }
   0xb   :  { %v21_v63 = vld [vmem:[%s7182_s2 + $0x100] sm:$0xff]  ;;  %v24_v5 = vld [vmem:[%s7182_s2 + $0x118] sm:$0xff]  ;;  %v26_v8 = vld [vmem:[%s7182_s2 + $0x128] sm:$0xff] }
   0xc   :  { %5584 = vmatpush3.bf16.msra.mxu0 %v5583_v10  ;;  %v6247_v2 = vpack.c.bf16 %v22_v1, %v21_v63  ;;  %v6258_v6 = vpack.c.bf16 %v24_v5, %v23_v3  ;;  %v25_v7 = vld [vmem:[%s7182_s2 + $0x120] sm:$0xff]  ;;  %v27_v10 = vld [vmem:[%s7182_s2 + $0x130] sm:$0xff]  ;;  %v30_v15 = vld [vmem:[%s7182_s2 + $0x148] sm:$0xff] }
   0xd   :  { %5232 = vmatprep.subr.mxu0 %v6054_v4  ;;  %v6266_v9 = vpack.c.bf16 %v26_v8, %v25_v7  ;;  %v29_v14 = vld [vmem:[%s7182_s2 + $0x140] sm:$0xff]  ;;  %v31_v18 = vld [vmem:[%s7182_s2 + $0x150] sm:$0xff]  ;;  %v6340_v60 = vld [vmem:[%s7182_s2 + $0x248] sm:$0xff] }
   0xe   :  { %v6288_v17 = vpack.c.bf16 %v30_v15, %v29_v14  ;;  %v423_v29 = vld [vmem:[%s7184_s1 + $0x110] ss:$0 sm:$0xff]  ;;  %v40_v3 = vld [vmem:[%s7184_s1 + $0xc8] sm:$0xff]  ;;  %v42_v5 = vld [vmem:[%s7184_s1 + $0xd8] sm:$0xff] }
   0xf   :  { %v6335_v59 = vld [vmem:[%s7182_s2 + $0x250] sm:$0xff]  ;;  %vm6505_vm7 = vmpackc.low %vm1263_vm5, %vm6062_vm6 }
  0x10   :  { %5233 = vmatpush3.msra.mxu0 %v88_v11  ;;  %v28_v11 = vld [vmem:[%s7182_s2 + $0x138] sm:$0xff]  ;;  %v41_v14 = vld [vmem:[%s7184_s1 + $0xd0] sm:$0xff] }
  0x11   :  { %5235 = vmatmul.mubr.msk.f32.vlgmr.msra.gmra.mrb[0].mxu0 %vm94_vm1, %v6119_v12  ;;  %v6277_v13 = vpack.c.bf16 %v28_v11, %v27_v10  ;;  %v6350_v10 = vpack.c.bf16 %v42_v5, %v40_v3  ;;  %v39_v11 = vld [vmem:[%s7184_s1 + $0xc0] sm:$0xff]  ;;  %v65_v3 = vld [vmem:[%s7182_s2 + $0x1f0] sm:$0xff]  ;;  %v66_v5 = vld [vmem:[%s7182_s2 + $0x1f8] sm:$0xff] }
  0x12   :  { %5274 = vmatprep.mubr.msk.f32.mxu0 %vm583_vm3, %v6058_v37 }
  0x77   :  { %v341_v30 = vpop.permute.xlu1 %340 }
  0xe4   :  { %v164_v22 = vpop.f32.mrb[0].mxu0 }
  0xe5   :  { %v165_v24 = vadd.f32 %v4932_v19, %v164_v22  ;;  %v5236_v25 = vpop.f32.mrb[1].mxu0  ;;  %v32_v19 = vld [vmem:[%s7182_s2 + $0x158] sm:$0xff] }
  0xe6   :  { %v6298_v20 = vpack.c.bf16 %v32_v19, %v31_v18 }
  0xe7   :  { %256 = vrot.lane.b32.xlu0 %v165_v24, %s6056_s17  ;;  %5242 = vmatmul.mubr.msk.f32.vlgmr.msra.gmra.mrb[0].mxu1 %vm175_vm2, %v165_v24 }
  0xe8   :  { %5590 = vmatpush3.bf16.msra.mxu1 %v5589_v23  ;;  %5248 = vmatprep.mubr.msk.f32.mxu1 %vm6053_vm0, %v6054_v4 }
  0xe9   :  { %5592 = vmatprep.subr.bf16.mxu1 %v5591_v26 }
  0xeb   :  { %338 = vrot.lane.b32.xlu0 %v6119_v12, %s6055_s7 }
  0xef   :  { %662 = vrot.lane.b32.xlu0 %v6119_v12, %s6057_s18 }
  0xf3   :  { %664 = vrot.lane.b32.xlu0 %v6132_v16, %s6057_s18 }
 0x159   :  { %v257_v27 = vpop.permute.xlu0 %256 }
 0x15a   :  { %5249 = vmatmul.mubr.msk.f32.vlgmr.msra.gmra.mrb[2].mxu1 %vm175_vm2, %v257_v27 }
 0x15b   :  { %5594 = vmatpush3.bf16.msra.mxu1 %v5591_v26 }
 0x15c   :  { %5595 = vmatprep.subr.bf16.mxu1 %v6052_v0 }
 0x15d   :  { %v339_v32 = vpop.permute.xlu0 %338 }
 0x15e   :  { %5255 = vmatprep.mubr.msk.f32.mxu1 %vm175_vm2, %v339_v32 }
 0x15f   :  { %5256 = vmatmul.mubr.msk.f32.vlgmr.msra.gmra.mrb[4].mxu1 %vm175_vm2, %v341_v30 }
 0x160   :  { %5597 = vmatpush3.bf16.msra.mxu1 %v6165_v31  ;;  %5262 = vmatprep.mubr.msk.f32.mxu1 %vm6053_vm0, %v6054_v4 }
 0x161   :  { %5599 = vmatprep.subr.bf16.mxu1 %v6165_v31  ;;  %v663_v56 = vpop.permute.xlu0 %662 }
 0x165   :  { %v665_v57 = vpop.permute.xlu0 %664 }
 0x1ba   :  { %v245_v34 = vpop.f32.mrb[0].mxu1 }
 0x1bb   :  { %v6176_v35 = vadd.f32 %v4934_v33, %v245_v34  ;;  %v5243_v36 = vpop.f32.mrb[1].mxu1 }
 0x1bd   :  { %5263 = vmatmul.mubr.msk.f32.vlgmr.msra.gmra.mrb[6].mxu1 %vm175_vm2, %v6176_v35 }
 0x1be   :  { %5601 = vmatpush3.bf16.msra.mxu1 %v6165_v31 }
 0x1bf   :  { %5603 = vmatprep.subr.bf16.mxu1 %v6191_v42 }
 0x22d   :  { %v6183_v38 = vpop.f32.mrb[2].mxu1 }
 0x22e   :  { %v5250_v41 = vpop.f32.mrb[3].mxu1 }
 0x232   :  { %v5257_v44 = vpop.f32.mrb[4].mxu1 }
 0x233   :  { %v412_v45 = vpop.f32.mrb[5].mxu1  ;;  %v6201_v47 = vadd.f32 %v5257_v44, %v4938_v43 }
 0x234   :  { %v6197_v46 = vadd.f32 %v4938_v43, %v412_v45 }
 0x236   :  { %500 = vrot.lane.b32.xlu1 %v6197_v46, %s6059_s4 }
 0x23a   :  { %502 = vrot.lane.b32.xlu1 %v6201_v47, %s6059_s4 }
 0x290   :  { %v493_v49 = vpop.f32.mrb[6].mxu1 }
 0x291   :  { %v497_v52 = vmul.f32 %v493_v49, %v6208_v48  ;;  %v5264_v53 = vpop.f32.mrb[7].mxu1 }
 0x292   :  { %v6317_v53 = vld [vmem:[%s7182_s2 + $0x220] sm:$0xff] }
 0x293   :  { %5272 = vmatprep.subr.mxu0 %v497_v52 }
 0x294   :  { %5273 = vmatpush3.msra.mxu0 %v497_v52 }
 0x295   :  { %5275 = vmatmul.mubr.msk.f32.vlgmr.msra.gmra.mrb[2].mxu0 %vm583_vm3, %v6058_v37  ;;  %5277 = vmatprep.subr.mxu0 %v422_v54 }
 0x296   :  { %5278 = vmatpush3.msra.mxu0 %v422_v54  ;;  %5279 = vmatprep.mubr.msk.f32.mxu0 %vm583_vm3, %v663_v56  ;;  %v6327_v56 = vld [vmem:[%s7182_s2 + $0x228] sm:$0xff] }
 0x297   :  { %5635 = vmatprep.subr.bf16.mxu0 %v6220_v55 }
 0x29d   :  { %5280 = vmatmul.mubr.msk.f32.vlgmr.msra.gmra.mrb[2].mxu0 %vm583_vm3, %v665_v57 }
 0x29e   :  { %5637 = vmatpush3.bf16.msra.mxu0 %v6220_v55 }
 0x29f   :  { %5324 = vmatprep.subr.mxu0 %v6176_v35 }
 0x2a8   :  { %v501_v58 = vpop.permute.xlu1 %500 }
 0x2a9   :  { %5269 = vmatprep.mubr.msk.f32.mxu1 %vm175_vm2, %v501_v58 }
 0x2ac   :  { %v503_v62 = vpop.permute.xlu1 %502 }
 0x2ad   :  { %5270 = vmatmul.mubr.msk.f32.vlgmr.msra.gmra.mrb[8].mxu1 %vm175_vm2, %v503_v62 }
 0x2ae   :  { %5605 = vmatpush3.bf16.msra.mxu1 %v6191_v42 }
 0x2af   :  { %5607 = vmatprep.subr.bf16.mxu1 %v6236_v61 }
 0x2b2   :  { %5609 = vmatpush3.bf16.msra.mxu1 %v6236_v61 }
 0x2b3   :  { %5611 = vmatprep.subr.bf16.mxu1 %v6247_v2 }
 0x2b6   :  { %5613 = vmatpush3.bf16.msra.mxu1 %v6247_v2 }
 0x2b7   :  { %5615 = vmatprep.subr.bf16.mxu1 %v6258_v6 }
 0x2ba   :  { %5617 = vmatpush3.bf16.msra.mxu1 %v6258_v6 }
 0x2bb   :  { %5619 = vmatprep.subr.bf16.mxu1 %v6266_v9 }
 0x2be   :  { %5621 = vmatpush3.bf16.msra.mxu1 %v6266_v9 }
 0x2bf   :  { %5623 = vmatprep.subr.bf16.mxu1 %v6277_v13 }
 0x2c2   :  { %5625 = vmatpush3.bf16.msra.mxu1 %v6277_v13 }
 0x2c3   :  { %5627 = vmatprep.subr.bf16.mxu1 %v6288_v17 }
 0x2c6   :  { %5629 = vmatpush3.bf16.msra.mxu1 %v6288_v17 }
 0x2c7   :  { %5631 = vmatprep.subr.bf16.mxu1 %v6298_v20 }
 0x2ca   :  { %5633 = vmatpush3.bf16.msra.mxu1 %v6298_v20 }
 0x2cb   :  { %5662 = vmatprep.subr.bf16.mxu1 %v6052_v0 }
 0x370   :  { %v5281_v21 = vpop.f32.mrb[2].mxu0 }
 0x371   :  { %v736_v22 = vpop.f32.mrb[3].mxu0 }
 0x380   :  { %v5271_v23 = vpop.f32.mrb[8].mxu1 }
 0x381   :  { %v5966_v24 = vadd.f32 %v5281_v21, %v5271_v23  ;;  %v574_v25 = vpop.f32.mrb[9].mxu1  ;;  %v6359_v21 = vpack.c.bf16 %v41_v14, %v39_v11  ;;  %v6478_v14 = vld [vmem:[%s7184_s1 + $0xf0] sm:$0xff] }
 0x382   :  { %v5967_v26 = vadd.f32 %v736_v22, %v574_v25  ;;  %v48_v25 = vld [vmem:[%s7182_s2 + $0x168] sm:$0xff] }
 0x383   :  { %v748_v27 = vmul.f32 0.2, %v5966_v24 }
 0x384   :  { %v747_v28 = vmul.f32 0.2, %v5967_v26 }
 0x385   :  { %v750_v30 = vmax.f32 %v5966_v24, %v748_v27  ;;  %v47_v24 = vld [vmem:[%s7182_s2 + $0x160] sm:$0xff] }
 0x386   :  { %v749_v32 = vmax.f32 %v5967_v26, %v747_v28  ;;  %v49_v26 = vld [vmem:[%s7182_s2 + $0x170] sm:$0xff]  ;;  %v6384_v27 = vpack.c.bf16 %v48_v25, %v47_v24  ;;  %v50_v28 = vld [vmem:[%s7182_s2 + $0x178] sm:$0xff] }
 0x387   :  { %v752_v34 = vmul.f32 %v750_v30, %v423_v29  ;;  %v51_v30 = vld [vmem:[%s7182_s2 + $0x180] sm:$0xff] }
 0x388   :  { %v751_v33 = vmul.f32 %v749_v32, %v423_v29  ;;  %v6390_v29 = vpack.c.bf16 %v50_v28, %v49_v26  ;;  %v52_v32 = vld [vmem:[%s7182_s2 + $0x188] sm:$0xff]  ;;  %v1095_v26 = vld [vmem:[%s7184_s1 + $0x18] sm:$0xff] }
 0x389   :  { %v1097_v28 = vld [vmem:[%s7184_s1 + $0x28] sm:$0xf] }
 0x38a   :  { %5314 = vmatprep.mubr.f32.mxu1 %v751_v33  ;;  %v6400_v33 = vpack.c.bf16 %v52_v32, %v51_v30 }
 0x38b   :  { %5315 = vmatmul.mubr.f32.vlgmr.msra.gmra.mrb[10].mxu1 %v752_v34  ;;  %v53_v34 = vld [vmem:[%s7182_s2 + $0x190] sm:$0xff] }
 0x38c   :  { %5664 = vmatpush1.bf16.msra.mxu1 %v6384_v27 }
 0x38d   :  { %5665 = vmatprep.subr.bf16.mxu1 %v6052_v0 }
 0x390   :  { %5667 = vmatpush1.bf16.msra.mxu1 %v6390_v29 }
 0x391   :  { %5668 = vmatprep.subr.bf16.mxu1 %v6052_v0 }
 0x394   :  { %5670 = vmatpush1.bf16.msra.mxu1 %v6400_v33 }
 0x395   :  { %5671 = vmatprep.subr.bf16.mxu1 %v6052_v0 }
 0x45e   :  { %v5316_v36 = vpop.f32.mrb[10].mxu1 }
 0x45f   :  { %v819_v39 = vpop.f32.mrb[11].mxu1  ;;  %v832_v40 = vsel %vm831_vm4, %v5316_v36, -inf }
 0x460   :  { %833 = vmax.xlane.f32.xlu0 %v832_v40  ;;  %v828_v41 = vsel %vm175_vm2, %v819_v39, -inf  ;;  %v55_v40 = vld [vmem:[%s7182_s2 + $0x1a0] sm:$0xff] }
 0x461   :  { %829 = vmax.xlane.f32.xlu1 %v828_v41  ;;  %v56_v41 = vld [vmem:[%s7182_s2 + $0x1a8] sm:$0xff] }
 0x472   :  { %1341 = vrot.lane.b32.xlu1 %v6119_v12, %s6061_s22 }
 0x476   :  { %1185 = vrot.lane.b32.xlu0 %v6176_v35, %s6056_s17 }
 0x47a   :  { %1844 = vrot.lane.b32.xlu0 %v6197_v46, %s6060_s16 }
 0x47e   :  { %1846 = vrot.lane.b32.xlu0 %v6201_v47, %s6060_s16 }
 0x482   :  { %2002 = vrot.lane.b32.xlu0 %v6119_v12, %s6063_s14 }
 0x486   :  { %2004 = vrot.lane.b32.xlu0 %v6132_v16, %s6063_s14 }
 0x4ed   :  { %v834_v43 = vpop.xlane.xlu0 %833 }
 0x4ee   :  { %v836_v44 = vsub.f32 %v5316_v36, %v834_v43  ;;  %v830_v45 = vpop.xlane.xlu1 %829  ;;  %v54_v36 = vld [vmem:[%s7182_s2 + $0x198] sm:$0xff]  ;;  %v6420_v43 = vpack.c.bf16 %v56_v41, %v55_v40  ;;  %v5656_v41 = vpack.c.bf16 %v1097_v28, %v1095_v26 }
 0x4ef   :  { %v835_v49 = vsub.f32 %v819_v39, %v830_v45  ;;  %v6410_v39 = vpack.c.bf16 %v54_v36, %v53_v34  ;;  %v58_v45 = vld [vmem:[%s7182_s2 + $0x1b8] sm:$0xff]  ;;  %v6048_v36 = vld [vmem:[%s7182_s2 + $0x240] sm:$0xff] }
 0x4f0   :  { %v839_v50 = vmul.f32 1.442695, %v836_v44  ;;  %v57_v44 = vld [vmem:[%s7182_s2 + $0x1b0] sm:$0xff] }
 0x4f1   :  { %v837_v51 = vmul.f32 1.442695, %v835_v49  ;;  %v1186_v23 = vpop.permute.xlu0 %1185  ;;  %5673 = vmatpush1.bf16.msra.mxu1 %v6410_v39  ;;  %v6430_v49 = vpack.c.bf16 %v58_v45, %v57_v44  ;;  %v1094_v44 = vld [vmem:[%s7184_s1 + $0x10] sm:$0xff]  ;;  %v1096_v45 = vld [vmem:[%s7184_s1 + $0x20] sm:$0xf] }
 0x4f2   :  { %5674 = vmatprep.subr.bf16.mxu1 %v6052_v0 }
 0x4f3   :  { %6010 = vpow2.f32 %v837_v51  ;;  %v60_v51 = vld [vmem:[%s7182_s2 + $0x1c8] sm:$0xff] }
 0x4f4   :  { %6012 = vpow2.f32 %v839_v50  ;;  %v59_v50 = vld [vmem:[%s7182_s2 + $0x1c0] sm:$0xff] }
 0x4f5   :  { %5676 = vmatpush1.bf16.msra.mxu1 %v6420_v43 }
 0x4f6   :  { %5677 = vmatprep.subr.bf16.mxu1 %v6052_v0 }
 0x4f9   :  { %5679 = vmatpush1.bf16.msra.mxu1 %v6430_v49 }
 0x4fa   :  { %5680 = vmatprep.subr.bf16.mxu1 %v6052_v0 }
 0x4fd   :  { %v6011_v52 = vpop.eup %6010 }
 0x4fe   :  { %v6013_v54 = vpop.eup %6012  ;;  %5321 = vmatprep.mubr.msk.f32.mxu0 %vm175_vm2, %v6011_v52 }
 0x4ff   :  { %5322 = vmatmul.mubr.msk.f32.vlgmr.msra.gmra.mrb[4].mxu0 %vm175_vm2, %v6013_v54 }
 0x500   :  { %5325 = vmatpush3.msra.mxu0 %v6176_v35  ;;  %5326 = vmatprep.mubr.msk.f32.mxu0 %vm583_vm3, %v6317_v53 }
 0x503   :  { %5327 = vmatmul.mubr.msk.f32.vlgmr.msra.gmra.mrb[6].mxu0 %vm583_vm3, %v6327_v56 }
 0x5d2   :  { %v5323_v57 = vpop.f32.mrb[4].mxu0 }
 0x5d3   :  { %6014 = vrcp.f32 %v5323_v57  ;;  %v913_v58 = vpop.f32.mrb[5].mxu0  ;;  %v62_v57 = vld [vmem:[%s7182_s2 + $0x1d8] sm:$0xff] }
 0x5d4   :  { %6016 = vrcp.f32 %v913_v58 }
 0x5d6   :  { %v5328_v62 = vpop.f32.mrb[6].mxu0 }
 0x5d7   :  { %v1008_v63 = vmul.f32 %v5328_v62, %v6335_v59  ;;  %v998_v1 = vpop.f32.mrb[7].mxu0  ;;  %v63_v62 = vld [vmem:[%s7182_s2 + $0x1e0] sm:$0xff] }
 0x5d8   :  { %v1007_v7 = vmul.f32 %v998_v1, %v6340_v60 }
 0x5da   :  { %v5638_v8 = vpack.c.bf16 %v1008_v63, %v1007_v7  ;;  %v64_v63 = vld [vmem:[%s7182_s2 + $0x1e8] sm:$0xff]  ;;  %v6470_v7 = vpack.c.bf16 %v66_v5, %v65_v3  ;;  %v70_v3 = vld [vmem:[%s7182_s2 + $0x218] sm:$0xff] }
 0x5db   :  { %v6460_v1 = vpack.c.bf16 %v64_v63, %v63_v62  ;;  %v69_v63 = vld [vmem:[%s7182_s2 + $0x210] sm:$0xff] }
 0x5dc   :  { %5639 = vmatprep.subr.bf16.mxu0 %v5638_v8  ;;  %v6549_v5 = vpack.c.bf16 %v70_v3, %v69_v63 }
 0x5dd   :  { %v6015_v15 = vpop.eup %6014  ;;  %5641 = vmatpush3.bf16.msra.mxu0 %v5638_v8 }
 0x5de   :  { %v6017_v18 = vpop.eup %6016  ;;  %5643 = vmatprep.subr.bf16.mxu0 %v6350_v10  ;;  %v925_v22 = vmul.f32 %v6015_v15, %v6013_v54  ;;  %v61_v54 = vld [vmem:[%s7182_s2 + $0x1d0] sm:$0xff]  ;;  %v6483_v15 = vld [vmem:[%s7184_s1 + $0x100] sm:$0xf] }
 0x5df   :  { %v923_v19 = vmul.f32 %v6017_v18, %v6011_v52  ;;  %v6440_v52 = vpack.c.bf16 %v60_v51, %v59_v50  ;;  %v6450_v58 = vpack.c.bf16 %v62_v57, %v61_v54  ;;  %v6488_v18 = vld [vmem:[%s7184_s1 + $0xf8] sm:$0xff]  ;;  %v5659_v50 = vpack.c.bf16 %v1096_v45, %v1094_v44  ;;  %v6527_v51 = vpop.permute.xlu1 %1341  ;;  %v67_v54 = vld [vmem:[%s7182_s2 + $0x200] sm:$0xff]  ;;  %v68_v57 = vld [vmem:[%s7182_s2 + $0x208] sm:$0xff] }
 0x5e0   :  { %v6539_v62 = vpack.c.bf16 %v68_v57, %v67_v54  ;;  %v4936_v44 = vld [vmem:[%s7182_s2 + $0x68] ss:$0 sm:$0xff] }
 0x5e1   :  { %5333 = vmatprep.mubr.msk.f32.mxu0 %vm175_vm2, %v923_v19  ;;  %5682 = vmatpush1.bf16.msra.mxu1 %v6440_v52  ;;  %v6493_v19 = vld [vmem:[%s7184_s1 + $0x108] sm:$0xf]  ;;  %v6567_v54 = vadd.f32 %v4936_v44, %v6183_v38 }
 0x5e2   :  { %5334 = vmatmul.mubr.msk.f32.vlgmr.msra.gmra.mrb[8].mxu0 %vm175_vm2, %v925_v22  ;;  %5683 = vmatprep.subr.bf16.mxu1 %v6052_v0  ;;  %v78_v38 = vld [vmem:[%s7182_s2 + $0x288] sm:$0xff] }
 0x5e3   :  { %5645 = vmatpush1.bf16.msra.mxu0 %v6359_v21  ;;  %1168 = vmatprep.mubr.f32.mxu0 %v6054_v4 }
 0x5e4   :  { %5647 = vmatprep.subr.bf16.mxu0 %v6350_v10 }
 0x5e5   :  { %5685 = vmatpush1.bf16.msra.mxu1 %v6450_v58 }
 0x5e6   :  { %4956 = vmatmul.mubr.msk.f32.vlgmr.msra.gmra.mrb[10].mxu0 %vm175_vm2, %v6197_v46  ;;  %5686 = vmatprep.subr.bf16.mxu1 %v6052_v0 }
 0x5e7   :  { %1174 = vmatprep.mubr.f32.mxu0 %v6054_v4  ;;  %5649 = vmatpush1.bf16.msra.mxu0 %v6359_v21 }
 0x5e9   :  { %5688 = vmatpush1.bf16.msra.mxu1 %v6460_v1 }
 0x5ea   :  { %4957 = vmatmul.mubr.msk.f32.gmra.mrb[12].mxu0 %vm175_vm2, %v6201_v47  ;;  %5689 = vmatprep.subr.bf16.mxu1 %v6052_v0 }
 0x5eb   :  { %1253 = vmatprep.mubr.f32.mxu0 %v6054_v4 }
 0x5ed   :  { %5691 = vmatpush1.bf16.msra.mxu1 %v6470_v7 }
 0x5ee   :  { %4958 = vmatmul.mubr.msk.f32.vlgmr.msra.gmra.mrb[14].mxu0 %vm175_vm2, %v1186_v23  ;;  %5692 = vmatprep.subr.bf16.mxu1 %v6052_v0 }
 0x5ef   :  { %1334 = vmatprep.mubr.f32.mxu0 %v6054_v4 }
 0x5f1   :  { %5694 = vmatpush1.bf16.msra.mxu1 %v6539_v62 }
 0x5f2   :  { %5695 = vmatprep.subr.bf16.mxu1 %v6052_v0 }
 0x5f5   :  { %5697 = vmatpush1.bf16.msra.mxu1 %v6549_v5 }
 0x5f6   :  { %5748 = vmatprep.subr.bf16.mxu1 %v6220_v55 }
 0x6b9   :  { %v1170_v8 = vpop.f32.mrb[10].mxu0 }
 0x6ba   :  { %v1172_v11 = vpop.f32.mrb[11].mxu0  ;;  %v1181_v23 = vmul.f32 %v1170_v8, %v6478_v14  ;;  %v1429_v8 = vlaneseq }
 0x6bb   :  { %v1182_v30 = vmul.f32 %v1172_v11, %v6488_v18 }
 0x6bc   :  { %v1430_v11 = vshrl.u32 %v1429_v8, 7  ;;  %v77_v8 = vld [vmem:[%s7182_s2 + $0x280] sm:$0xff] }
 0x6bd   :  { %v1176_v22 = vpop.f32.mrb[12].mxu0 }
 0x6be   :  { %v1183_v24 = vmul.f32 %v1176_v22, %v6483_v15  ;;  %v1178_v25 = vpop.f32.mrb[13].mxu0  ;;  %v6553_v22 = vsub.s32 1, %v1430_v11 }
 0x6bf   :  { %v1184_v32 = vmul.f32 %v1178_v25, %v6493_v19 }
 0x6c0   :  { %v5653_v34 = vpack.c.bf16 %v1183_v24, %v1181_v23  ;;  %v4955_v23 = vld [vmem:[%s7184_s1 + $0x120] ss:$8 sm:$0x3]  ;;  %v6558_v24 = vsub.s32 0, %v1430_v11  ;;  %v6578_v11 = vpack.c.bf16 %v78_v38, %v77_v8 }
 0x6c1   :  { %v5650_v40 = vpack.c.bf16 %v1184_v32, %v1182_v30  ;;  %v1436_v32 = vrot.slane %v4955_v23, %v6553_v22 }
 0x6c3   :  { %5652 = vmatprep.subr.msk.bf16.mxu0 %vm6505_vm7, %v5650_v40  ;;  %v1432_v40 = vrot.slane %v4955_v23, %v6558_v24 }
 0x6c4   :  { %5655 = vmatpush1.bf16.msk.msra.mxu0 %vm6505_vm7, %v5653_v34 }
 0x6c5   :  { %5658 = vmatprep.subr.msk.bf16.mxu0 %vm6505_vm7, %v5656_v41 }
 0x6c7   :  { %4961 = vmatmul.mubr.msk.f32.vlgmr.msra.gmra.mrb[14].mxu0 %vm1260_vm8, %v6058_v37 }
 0x6c8   :  { %5661 = vmatpush1.bf16.msk.msra.mxu0 %vm6505_vm7, %v5659_v50  ;;  %1415 = vmatprep.mubr.f32.mxu0 %v6054_v4 }
 0x6c9   :  { %5698 = vmatprep.subr.bf16.mxu0 %v6052_v0 }
 0x6cf   :  { %4964 = vmatmul.mubr.msk.f32.vlgmr.msra.gmra.mrb[14].mxu0 %vm1260_vm8, %v6527_v51 }
 0x6d0   :  { %5342 = vmatprep.mubr.msk.f32.mxu0 %vm6053_vm0, %v6054_v4  ;;  %5700 = vmatpush3.bf16.msra.mxu0 %v6578_v11 }
 0x6d1   :  { %5340 = vmatprep.subr.mxu0 %v6054_v4 }
 0x7a2   :  { %v1417_v25 = vpop.f32.mrb[14].mxu0 }
 0x7a3   :  { %v1424_v26 = vmul.f32 0.2, %v1417_v25  ;;  %v1419_v28 = vpop.f32.mrb[15].mxu0 }
 0x7a4   :  { %v1425_v30 = vmul.f32 0.2, %v1419_v28 }
 0x7a5   :  { %v1426_v34 = vmax.f32 %v1417_v25, %v1424_v26 }
 0x7a6   :  { %v1427_v41 = vmax.f32 %v1419_v28, %v1425_v30  ;;  %v5702_v30 = vpack.c.bf16 %v6201_v47, %v6197_v46 }
 0x7a7   :  { %v1439_v50 = vmul.f32 %v1432_v40, %v1426_v34  ;;  %v6609_v34 = vld [vmem:[%s7182_s2 + $0x238] sm:$0xff]  ;;  %v6618_v40 = vld [vmem:[%s7182_s2 + $0x240] sm:$0xff] }
 0x7a8   :  { %v1440_v45 = vmul.f32 %v1436_v32, %v1427_v41  ;;  %v6599_v32 = vld [vmem:[%s7182_s2 + $0x230] sm:$0xff] }
 0x7aa   :  { %4965 = vmatprep.mubr.msk.f32.mxu1 %vm1441_vm9, %v1440_v45 }
 0x7ab   :  { %1510 = vmatmul.mubr.f32.vlgmr.msra.gmra.mrb[12].mxu1 %v1439_v50 }
 0x7ac   :  { %5750 = vmatpush3.bf16.msra.mxu1 %v6220_v55  ;;  %v6585_v55 = vld [vmem:[%s7182_s2 + $0x290] sm:$0xff] }
 0x7ad   :  { %5433 = vmatprep.subr.mxu1 %v6567_v54  ;;  %5341 = vmatpush3.msra.mxu0 %v6585_v55 }
 0x7ae   :  { %5701 = vmatprep.subr.bf16.mxu0 %v6052_v0 }
 0x87e   :  { %v1511_v57 = vpop.f32.mrb[12].mxu1 }
 0x87f   :  { %v1513_v63 = vpop.f32.mrb[13].mxu1  ;;  %v1516_v3 = vsel %vm1515_vm10, %v1511_v57, -inf }
 0x880   :  { %1517 = vmax.xlane.f32.xlu1 %v1516_v3  ;;  %v6634_v63 = vld [vmem:[%s7182_s2 + $0x260] sm:$0xff] }
 0x90d   :  { %v1518_v23 = vpop.xlane.xlu1 %1517 }
 0x90e   :  { %v1519_v25 = vsub.f32 %v1511_v57, %v1518_v23  ;;  %v6629_v57 = vld [vmem:[%s7182_s2 + $0x258] sm:$0xff]  ;;  %v6641_v23 = vld [vmem:[%s7182_s2 + $0x268] sm:$0xff] }
 0x910   :  { %v1520_v26 = vmul.f32 1.442695, %v1519_v25 }
 0x912   :  { %6018 = vpow2.f32 %v1520_v26 }
 0x91c   :  { %v6019_v28 = vpop.eup %6018 }
 0x91d   :  { %5343 = vmatmul.mubr.msk.f32.vlgmr.msra.gmra.mrb[16].mxu0 %vm1515_vm10, %v6019_v28 }
 0x91e   :  { %5704 = vmatpush3.bf16.msk.msra.mxu0 %vm6505_vm7, %v5702_v30  ;;  %5349 = vmatprep.mubr.msk.f32.mxu0 %vm6053_vm0, %v6054_v4 }
 0x91f   :  { %5705 = vmatprep.subr.bf16.mxu0 %v6052_v0 }
 0x921   :  { %5350 = vmatmul.mubr.msk.f32.vlgmr.msra.gmra.mrb[18].mxu0 %vm1260_vm8, %v6599_v32 }
 0x922   :  { %5352 = vmatprep.mubr.msk.f32.mxu0 %vm6053_vm0, %v6054_v4 }
 0x925   :  { %5353 = vmatmul.mubr.msk.f32.gmra.mrb[20].mxu0 %vm1260_vm8, %v6609_v34 }
 0x926   :  { %5355 = vmatprep.mubr.msk.f32.mxu0 %vm6053_vm0, %v6054_v4 }
 0x929   :  { %5356 = vmatmul.mubr.msk.f32.gmra.mrb[22].mxu0 %vm1260_vm8, %v6618_v40 }
 0x92a   :  { %5364 = vmatprep.mubr.msk.f32.mxu0 %vm6053_vm0, %v6054_v4 }
 0x9f0   :  { %v1591_v41 = vpop.f32.mrb[16].mxu0 }
 0x9f1   :  { %v5344_v44 = vpop.f32.mrb[17].mxu0  ;;  %6020 = vrcp.f32 %v1591_v41 }
 0x9f4   :  { %v1674_v45 = vpop.f32.mrb[18].mxu0 }
 0x9f5   :  { %v5351_v50 = vpop.f32.mrb[19].mxu0  ;;  %v1688_v8 = vmul.f32 %v1674_v45, %v6629_v57  ;;  %v1845_v45 = vpop.permute.xlu0 %1844 }
 0x9f8   :  { %v1679_v3 = vpop.f32.mrb[20].mxu0 }
 0x9f9   :  { %v1689_v16 = vmul.f32 %v1679_v3, %v6634_v63  ;;  %v5354_v38 = vpop.f32.mrb[21].mxu0 }
 0x9fb   :  { %v5706_v25 = vpack.c.bf16 %v1689_v16, %v1688_v8  ;;  %v6021_v30 = vpop.eup %6020 }
 0x9fc   :  { %v1684_v26 = vpop.f32.mrb[22].mxu0  ;;  %v1596_v50 = vmul.f32 %v6021_v30, %v6019_v28  ;;  %v1847_v28 = vpop.permute.xlu0 %1846 }
 0x9fd   :  { %v1690_v41 = vmul.f32 %v1684_v26, %v6641_v23  ;;  %5707 = vmatpush3.bf16.msra.mxu0 %v5706_v25  ;;  %v5357_v44 = vpop.f32.mrb[23].mxu0  ;;  %v1768_v26 = vld [vmem:[%s7184_s1 + $0x30] sm:$0xff] }
 0x9fe   :  { %5362 = vmatprep.subr.mxu0 %v6054_v4 }
 0xa01   :  { %5363 = vmatpush3.msra.mxu0 %v1690_v41 }
 0xa02   :  { %5365 = vmatmul.mubr.msk.f32.vlgmr.msra.gmra.mrb[24].mxu0 %vm1515_vm10, %v1596_v50  ;;  %5708 = vmatprep.subr.bf16.mxu0 %v6052_v0 }
 0xa03   :  { %5710 = vmatpush3.bf16.msra.mxu0 %v6165_v31  ;;  %5371 = vmatprep.mubr.msk.f32.mxu0 %vm6053_vm0, %v6054_v4 }
 0xa04   :  { %5712 = vmatprep.subr.bf16.mxu0 %v6165_v31 }
 0xa06   :  { %5372 = vmatmul.mubr.msk.f32.vlgmr.msra.gmra.mrb[26].mxu0 %vm175_vm2, %v6567_v54 }
 0xa07   :  { %5714 = vmatpush3.bf16.msra.mxu0 %v6165_v31  ;;  %5378 = vmatprep.mubr.msk.f32.mxu0 %vm175_vm2, %v1845_v45  ;;  %v2003_v31 = vpop.permute.xlu0 %2002 }
 0xa0a   :  { %5379 = vmatmul.mubr.msk.f32.vlgmr.msra.gmra.mrb[28].mxu0 %vm175_vm2, %v1847_v28  ;;  %v6698_v28 = vld [vmem:[%s7182_s2 + $0x88] ss:$0 sm:$0xff] }
 0xa0b   :  { %5383 = vmatprep.mubr.msk.f32.mxu0 %vm583_vm3, %v6058_v37  ;;  %v2005_v30 = vpop.permute.xlu0 %2004 }
 0xad5   :  { %v6658_v3 = vpop.f32.mrb[24].mxu0 }
 0xad6   :  { %v5366_v8 = vpop.f32.mrb[25].mxu0 }
 0xad9   :  { %v1839_v16 = vpop.f32.mrb[26].mxu0 }
 0xada   :  { %v1843_v38 = vmul.f32 %v1839_v16, %v6208_v48  ;;  %v5373_v25 = vpop.f32.mrb[27].mxu0 }
 0xadc   :  { %5381 = vmatprep.subr.mxu0 %v1843_v38 }
 0xadd   :  { %5382 = vmatpush3.msra.mxu0 %v1843_v38 }
 0xade   :  { %5384 = vmatmul.mubr.msk.f32.vlgmr.msra.gmra.mrb[28].mxu0 %vm583_vm3, %v6058_v37  ;;  %5386 = vmatprep.subr.mxu0 %v1768_v26 }
 0xadf   :  { %5388 = vmatprep.mubr.msk.f32.mxu0 %vm583_vm3, %v2003_v31  ;;  %5387 = vmatpush3.msra.mxu0 %v1768_v26 }
 0xae0   :  { %5716 = vmatprep.subr.bf16.mxu0 %v6191_v42 }
 0xae6   :  { %5389 = vmatmul.mubr.msk.f32.vlgmr.msra.gmra.mrb[28].mxu0 %vm583_vm3, %v2005_v30 }
 0xae7   :  { %5718 = vmatpush3.bf16.msra.mxu0 %v6191_v42 }
 0xae8   :  { %5720 = vmatprep.subr.bf16.mxu0 %v6236_v61 }
 0xaeb   :  { %5722 = vmatpush3.bf16.msra.mxu0 %v6236_v61 }
 0xaec   :  { %5724 = vmatprep.subr.bf16.mxu0 %v6247_v2 }
 0xaef   :  { %5726 = vmatpush3.bf16.msra.mxu0 %v6247_v2 }
 0xaf0   :  { %5728 = vmatprep.subr.bf16.mxu0 %v6258_v6 }
 0xaf3   :  { %5730 = vmatpush3.bf16.msra.mxu0 %v6258_v6  ;;  %v1769_v6 = vld [vmem:[%s7184_s1 + $0x130] ss:$0 sm:$0xff] }
 0xaf4   :  { %5732 = vmatprep.subr.bf16.mxu0 %v6266_v9 }
 0xaf7   :  { %5734 = vmatpush3.bf16.msra.mxu0 %v6266_v9 }
 0xaf8   :  { %5736 = vmatprep.subr.bf16.mxu0 %v6277_v13 }
 0xafb   :  { %5738 = vmatpush3.bf16.msra.mxu0 %v6277_v13 }
 0xafc   :  { %5740 = vmatprep.subr.bf16.mxu0 %v6288_v17 }
 0xaff   :  { %5742 = vmatpush3.bf16.msra.mxu0 %v6288_v17 }
 0xb00   :  { %5744 = vmatprep.subr.bf16.mxu0 %v6298_v20 }
 0xb03   :  { %5746 = vmatpush3.bf16.msra.mxu0 %v6298_v20 }
 0xbb9   :  { %v5390_v42 = vpop.f32.mrb[28].mxu0 }
 0xbba   :  { %v2088_v48 = vmul.f32 0.2, %v5390_v42  ;;  %v2076_v61 = vpop.f32.mrb[29].mxu0 }
 0xbbb   :  { %v2087_v2 = vmul.f32 0.2, %v2076_v61 }
 0xbbc   :  { %v2090_v9 = vmax.f32 %v5390_v42, %v2088_v48 }
 0xbbd   :  { %v2089_v41 = vmax.f32 %v2076_v61, %v2087_v2 }
 0xbbe   :  { %v2092_v13 = vmul.f32 %v2090_v9, %v1769_v6 }
 0xbbf   :  { %v2091_v44 = vmul.f32 %v2089_v41, %v1769_v6 }
 0xbc1   :  { %5423 = vmatprep.mubr.f32.mxu0 %v2091_v44 }
 0xbc2   :  { %5424 = vmatmul.mubr.f32.vlgmr.msra.gmra.mrb[30].mxu0 %v2092_v13 }
 0xc95   :  { %v5425_v50 = vpop.f32.mrb[30].mxu0 }
 0xc96   :  { %v2159_v17 = vpop.f32.mrb[31].mxu0  ;;  %v2171_v45 = vsel %vm831_vm4, %v5425_v50, -inf }
 0xc97   :  { %2172 = vmax.xlane.f32.xlu1 %v2171_v45  ;;  %v2168_v20 = vsel %vm175_vm2, %v2159_v17, -inf }
 0xc98   :  { %2169 = vmax.xlane.f32.xlu0 %v2168_v20 }
 0xca8   :  { %2432 = vrot.lane.b32.xlu1 %v6197_v46, %s6056_s17 }
 0xcac   :  { %2521 = vrot.lane.b32.xlu1 %v6567_v54, %s6056_s17 }
 0xcae   :  { %2434 = vrot.lane.b32.xlu0 %v6201_v47, %s6056_s17 }
 0xcb0   :  { %2673 = vrot.lane.b32.xlu1 %v6119_v12, %s6064_s28 }
 0xcb2   :  { %1692 = vrot.lane.b32.xlu0 %v6698_v28, %s6056_s17 }
 0xcb6   :  { %3093 = vrot.lane.b32.xlu0 %v6176_v35, %s6059_s4 }
 0xcba   :  { %3013 = vrot.lane.b32.xlu0 %v6698_v28, %s6060_s16 }
 0xcbe   :  { %3098 = vrot.lane.b32.xlu0 %v6567_v54, %s6059_s4 }
 0xcc2   :  { %2342 = vrot.lane.b32.xlu0 %v6698_v28, %s6059_s4 }
 0xd24   :  { %v2173_v46 = vpop.xlane.xlu1 %2172 }
 0xd25   :  { %v2175_v47 = vsub.f32 %v5425_v50, %v2173_v46  ;;  %v2170_v8 = vpop.xlane.xlu0 %2169 }
 0xd26   :  { %v2174_v16 = vsub.f32 %v2159_v17, %v2170_v8 }
 0xd27   :  { %v2178_v38 = vmul.f32 1.442695, %v2175_v47 }
 0xd28   :  { %v2176_v25 = vmul.f32 1.442695, %v2174_v16  ;;  %v6711_v26 = vpop.permute.xlu1 %2432 }
 0xd29   :  { %v6713_v35 = vpop.permute.xlu0 %2434 }
 0xd2a   :  { %6022 = vpow2.f32 %v2176_v25  ;;  %v5815_v31 = vpack.c.bf16 %v6713_v35, %v6711_v26 }
 0xd2b   :  { %6024 = vpow2.f32 %v2178_v38 }
 0xd2c   :  { %v2522_v12 = vpop.permute.xlu1 %2521 }
 0xd34   :  { %v6023_v30 = vpop.eup %6022 }
 0xd35   :  { %v6025_v42 = vpop.eup %6024  ;;  %5430 = vmatprep.mubr.msk.f32.mxu1 %vm175_vm2, %v6023_v30 }
 0xd36   :  { %5431 = vmatmul.mubr.msk.f32.vlgmr.msra.gmra.mrb[14].mxu1 %vm175_vm2, %v6025_v42 }
 0xd37   :  { %5434 = vmatpush3.msra.mxu1 %v6567_v54  ;;  %5435 = vmatprep.mubr.msk.f32.mxu1 %vm583_vm3, %v6317_v53 }
 0xd38   :  { %5756 = vmatprep.subr.bf16.mxu1 %v6350_v10 }
 0xd3a   :  { %5436 = vmatmul.mubr.msk.f32.vlgmr.msra.gmra.mrb[16].mxu1 %vm583_vm3, %v6327_v56 }
 0xd3b   :  { %5758 = vmatpush1.bf16.msra.mxu1 %v6359_v21  ;;  %2504 = vmatprep.mubr.f32.mxu1 %v6054_v4 }
 0xd3c   :  { %5760 = vmatprep.subr.bf16.mxu1 %v6350_v10 }
 0xd3e   :  { %4986 = vmatmul.mubr.msk.f32.vlgmr.msra.gmra.mrb[18].mxu1 %vm175_vm2, %v6711_v26 }
 0xd3f   :  { %2510 = vmatprep.mubr.f32.mxu1 %v6054_v4  ;;  %5762 = vmatpush1.bf16.msra.mxu1 %v6359_v21 }
 0xd42   :  { %4987 = vmatmul.mubr.msk.f32.gmra.mrb[20].mxu1 %vm175_vm2, %v6713_v35 }
 0xd43   :  { %2589 = vmatprep.mubr.f32.mxu1 %v6054_v4 }
 0xd46   :  { %4988 = vmatmul.mubr.msk.f32.vlgmr.msra.gmra.mrb[22].mxu1 %vm175_vm2, %v2522_v12  ;;  %v2426_v12 = vld [vmem:[%s7184_s1 + $0x40] sm:$0xff] }
 0xd47   :  { %2666 = vmatprep.mubr.f32.mxu1 %v6054_v4 }
 0xe09   :  { %v5432_v53 = vpop.f32.mrb[14].mxu1 }
 0xe0a   :  { %6026 = vrcp.f32 %v5432_v53  ;;  %v2252_v56 = vpop.f32.mrb[15].mxu1  ;;  %v2428_v53 = vld [vmem:[%s7184_s1 + $0x50] sm:$0xf] }
 0xe0b   :  { %6028 = vrcp.f32 %v2252_v56  ;;  %v6776_v56 = vpop.permute.xlu1 %2673 }
 0xe0d   :  { %v5437_v54 = vpop.f32.mrb[16].mxu1 }
 0xe0e   :  { %v2341_v48 = vmul.f32 %v5437_v54, %v6335_v59  ;;  %v2331_v61 = vpop.f32.mrb[17].mxu1  ;;  %v2427_v59 = vld [vmem:[%s7184_s1 + $0x48] sm:$0xff] }
 0xe0f   :  { %v2340_v2 = vmul.f32 %v2331_v61, %v6340_v60  ;;  %v2429_v60 = vld [vmem:[%s7184_s1 + $0x58] sm:$0xf]  ;;  %v4985_v61 = vld [vmem:[%s7184_s1 + $0x140] ss:$8 sm:$0x3] }
 0xe11   :  { %v5751_v6 = vpack.c.bf16 %v2341_v48, %v2340_v2  ;;  %v2506_v9 = vpop.f32.mrb[18].mxu1 }
 0xe12   :  { %v2508_v41 = vpop.f32.mrb[19].mxu1  ;;  %v2517_v17 = vmul.f32 %v2506_v9, %v6478_v14 }
 0xe13   :  { %5752 = vmatprep.subr.bf16.mxu0 %v5751_v6  ;;  %v2518_v8 = vmul.f32 %v2508_v41, %v6488_v18 }
 0xe14   :  { %v6027_v44 = vpop.eup %6026  ;;  %5754 = vmatpush3.bf16.msra.mxu0 %v5751_v6 }
 0xe15   :  { %v6029_v13 = vpop.eup %6028  ;;  %v2512_v50 = vpop.f32.mrb[20].mxu1  ;;  %5811 = vmatprep.subr.bf16.mxu0 %v6052_v0  ;;  %v2264_v47 = vmul.f32 %v6027_v44, %v6025_v42  ;;  %v5772_v42 = vpack.c.bf16 %v2428_v53, %v2426_v12  ;;  %v2768_v44 = vrot.slane %v4985_v61, %v6553_v22 }
 0xe16   :  { %v2519_v45 = vmul.f32 %v2512_v50, %v6483_v15  ;;  %v2514_v20 = vpop.f32.mrb[21].mxu1  ;;  %v2262_v46 = vmul.f32 %v6029_v13, %v6023_v30  ;;  %v5769_v30 = vpack.c.bf16 %v2429_v60, %v2427_v59  ;;  %v2764_v50 = vrot.slane %v4985_v61, %v6558_v24 }
 0xe17   :  { %v2520_v16 = vmul.f32 %v2514_v20, %v6493_v19 }
 0xe18   :  { %v5766_v38 = vpack.c.bf16 %v2519_v45, %v2517_v17  ;;  %5442 = vmatprep.mubr.msk.f32.mxu0 %vm175_vm2, %v2262_v46 }
 0xe19   :  { %v5763_v25 = vpack.c.bf16 %v2520_v16, %v2518_v8  ;;  %5443 = vmatmul.mubr.msk.f32.vlgmr.msra.gmra.mrb[8].mxu0 %vm175_vm2, %v2264_v47 }
 0xe1a   :  { %5813 = vmatpush3.bf16.msra.mxu0 %v6578_v11  ;;  %5451 = vmatprep.mubr.msk.f32.mxu0 %vm6053_vm0, %v6054_v4 }
 0xe1b   :  { %5765 = vmatprep.subr.msk.bf16.mxu1 %vm6505_vm7, %v5763_v25  ;;  %5449 = vmatprep.subr.mxu0 %v6054_v4 }
 0xe1c   :  { %5768 = vmatpush1.bf16.msk.msra.mxu1 %vm6505_vm7, %v5766_v38 }
 0xe1d   :  { %5771 = vmatprep.subr.msk.bf16.mxu1 %vm6505_vm7, %v5769_v30  ;;  %v1693_v30 = vpop.permute.xlu0 %1692 }
 0xe1e   :  { %5450 = vmatpush3.msra.mxu0 %v6585_v55 }
 0xe1f   :  { %4991 = vmatmul.mubr.msk.f32.vlgmr.msra.gmra.mrb[22].mxu1 %vm1260_vm8, %v6058_v37  ;;  %5814 = vmatprep.subr.bf16.mxu0 %v6052_v0 }
 0xe20   :  { %5774 = vmatpush1.bf16.msk.msra.mxu1 %vm6505_vm7, %v5772_v42  ;;  %2747 = vmatprep.mubr.f32.mxu1 %v6054_v4 }
 0xe21   :  { %5775 = vmatprep.subr.bf16.mxu1 %v6052_v0 }
 0xe27   :  { %4994 = vmatmul.mubr.msk.f32.vlgmr.msra.gmra.mrb[22].mxu1 %vm1260_vm8, %v6776_v56 }
 0xe28   :  { %5777 = vmatpush1.bf16.msra.mxu1 %v6384_v27 }
 0xe29   :  { %5778 = vmatprep.subr.bf16.mxu1 %v6052_v0 }
 0xe2c   :  { %5780 = vmatpush1.bf16.msra.mxu1 %v6390_v29 }
 0xe2d   :  { %5781 = vmatprep.subr.bf16.mxu1 %v6052_v0 }
 0xe30   :  { %5783 = vmatpush1.bf16.msra.mxu1 %v6400_v33 }
 0xe31   :  { %5784 = vmatprep.subr.bf16.mxu1 %v6052_v0 }
 0xe34   :  { %5786 = vmatpush1.bf16.msra.mxu1 %v6410_v39 }
 0xe35   :  { %5787 = vmatprep.subr.bf16.mxu1 %v6052_v0 }
 0xe38   :  { %5789 = vmatpush1.bf16.msra.mxu1 %v6420_v43 }
 0xe39   :  { %5790 = vmatprep.subr.bf16.mxu1 %v6052_v0 }
 0xe3c   :  { %5792 = vmatpush1.bf16.msra.mxu1 %v6430_v49 }
 0xe3d   :  { %5793 = vmatprep.subr.bf16.mxu1 %v6052_v0 }
 0xe40   :  { %5795 = vmatpush1.bf16.msra.mxu1 %v6440_v52 }
 0xe41   :  { %5796 = vmatprep.subr.bf16.mxu1 %v6052_v0 }
 0xe44   :  { %5798 = vmatpush1.bf16.msra.mxu1 %v6450_v58 }
 0xe45   :  { %5799 = vmatprep.subr.bf16.mxu1 %v6052_v0 }
 0xe48   :  { %5801 = vmatpush1.bf16.msra.mxu1 %v6460_v1 }
 0xe49   :  { %5802 = vmatprep.subr.bf16.mxu1 %v6052_v0 }
 0xe4c   :  { %5804 = vmatpush1.bf16.msra.mxu1 %v6470_v7 }
 0xe4d   :  { %5805 = vmatprep.subr.bf16.mxu1 %v6052_v0 }
 0xe50   :  { %5807 = vmatpush1.bf16.msra.mxu1 %v6539_v62 }
 0xe51   :  { %5808 = vmatprep.subr.bf16.mxu1 %v6052_v0 }
 0xe54   :  { %5810 = vmatpush1.bf16.msra.mxu1 %v6549_v5 }
 0xe55   :  { %5836 = vmatprep.subr.bf16.mxu1 %v6350_v10 }
 0xeec   :  { %v6804_v54 = vpop.f32.mrb[8].mxu0 }
 0xeed   :  { %v6806_v48 = vpop.f32.mrb[9].mxu0 }
 0xefa   :  { %v2749_v2 = vpop.f32.mrb[22].mxu1 }
 0xefb   :  { %v2756_v6 = vmul.f32 0.2, %v2749_v2  ;;  %v2751_v9 = vpop.f32.mrb[23].mxu1 }
 0xefc   :  { %v2757_v41 = vmul.f32 0.2, %v2751_v9 }
 0xefd   :  { %v2758_v13 = vmax.f32 %v2749_v2, %v2756_v6 }
 0xefe   :  { %v2759_v17 = vmax.f32 %v2751_v9, %v2757_v41  ;;  %v3103_v9 = vld [vmem:[%s7182_s2 + $0x90] sm:$0xff]  ;;  %v3104_v41 = vld [vmem:[%s7182_s2 + $0x98] sm:$0xff] }
 0xeff   :  { %v2771_v20 = vmul.f32 %v2764_v50, %v2758_v13  ;;  %v3094_v13 = vpop.permute.xlu0 %3093 }
 0xf00   :  { %v2772_v45 = vmul.f32 %v2768_v44, %v2759_v17 }
 0xf02   :  { %4995 = vmatprep.mubr.msk.f32.mxu1 %vm1441_vm9, %v2772_v45  ;;  %v1765_v45 = vadd.f32 %v6658_v3, %v1693_v30  ;;  %v3183_v3 = vld [vmem:[%s7182_s2 + $0xa8] sm:$0xff] }
 0xf03   :  { %2841 = vmatmul.mubr.f32.vlgmr.msra.gmra.mrb[24].mxu1 %v2771_v20  ;;  %v5822_v20 = vpack.c.bf16 %v3104_v41, %v3103_v9 }
 0xf04   :  { %5838 = vmatpush1.bf16.msra.mxu1 %v6359_v21  ;;  %3512 = vmatprep.mubr.f32.mxu1 %v6054_v4 }
 0xfd6   :  { %v2842_v46 = vpop.f32.mrb[24].mxu1 }
 0xfd7   :  { %v2844_v59 = vpop.f32.mrb[25].mxu1  ;;  %v2846_v60 = vsel %vm1515_vm10, %v2842_v46, -inf }
 0xfd8   :  { %2847 = vmax.xlane.f32.xlu1 %v2846_v60 }
0x1065   :  { %v2848_v47 = vpop.xlane.xlu1 %2847 }
0x1066   :  { %v2849_v8 = vsub.f32 %v2842_v46, %v2848_v47  ;;  %v3096_v46 = vadd.f32 %v3094_v13, %v1765_v45  ;;  %v3184_v47 = vld [vmem:[%s7182_s2 + $0xb0] sm:$0xff] }
0x1067   :  { %v5006_v45 = vld [vmem:[%s7182_s2 + $0xd0] ss:$0 sm:$0xff] }
0x1068   :  { %v2850_v16 = vmul.f32 1.442695, %v2849_v8  ;;  %v3097_v60 = vmax.f32 %v3096_v46, 0.0  ;;  %v5825_v8 = vpack.c.bf16 %v3184_v47, %v3183_v3 }
0x106a   :  { %6030 = vpow2.f32 %v2850_v16  ;;  %v3263_v16 = vld [vmem:[%s7182_s2 + $0xc0] sm:$0xff] }
0x1074   :  { %v6031_v38 = vpop.eup %6030 }
0x1075   :  { %5452 = vmatmul.mubr.msk.f32.vlgmr.msra.gmra.mrb[32].mxu0 %vm1515_vm10, %v6031_v38 }
0x1076   :  { %5817 = vmatpush3.bf16.msk.msra.mxu0 %vm6505_vm7, %v5815_v31  ;;  %5458 = vmatprep.mubr.msk.f32.mxu0 %vm6053_vm0, %v6054_v4 }
0x1077   :  { %5818 = vmatprep.subr.bf16.mxu0 %v6052_v0 }
0x1079   :  { %5459 = vmatmul.mubr.msk.f32.vlgmr.msra.gmra.mrb[34].mxu0 %vm1260_vm8, %v6599_v32 }
0x107a   :  { %5461 = vmatprep.mubr.msk.f32.mxu0 %vm6053_vm0, %v6054_v4 }
0x107d   :  { %5462 = vmatmul.mubr.msk.f32.gmra.mrb[36].mxu0 %vm1260_vm8, %v6609_v34 }
0x107e   :  { %5464 = vmatprep.mubr.msk.f32.mxu0 %vm6053_vm0, %v6054_v4 }
0x1081   :  { %5465 = vmatmul.mubr.msk.f32.gmra.mrb[38].mxu0 %vm1260_vm8, %v6618_v40 }
0x1082   :  { %5473 = vmatprep.mubr.msk.f32.mxu0 %vm6053_vm0, %v6054_v4 }
0x1148   :  { %v2921_v26 = vpop.f32.mrb[32].mxu0 }
0x1149   :  { %v5453_v35 = vpop.f32.mrb[33].mxu0  ;;  %6032 = vrcp.f32 %v2921_v26 }
0x114a   :  { %v3014_v35 = vpop.permute.xlu0 %3013 }
0x114c   :  { %v2996_v31 = vpop.f32.mrb[34].mxu0 }
0x114d   :  { %v5460_v25 = vpop.f32.mrb[35].mxu0  ;;  %v3010_v53 = vmul.f32 %v2996_v31, %v6629_v57 }
0x114e   :  { %v3099_v31 = vpop.permute.xlu0 %3098 }
0x1150   :  { %v3001_v12 = vpop.f32.mrb[36].mxu0 }
0x1151   :  { %v3011_v42 = vmul.f32 %v3001_v12, %v6634_v63  ;;  %v5463_v61 = vpop.f32.mrb[37].mxu0 }
0x1152   :  { %v2343_v25 = vpop.permute.xlu0 %2342 }
0x1153   :  { %v5819_v2 = vpack.c.bf16 %v3011_v42, %v3010_v53  ;;  %v6033_v44 = vpop.eup %6032  ;;  %v5970_v30 = vadd.f32 %v6698_v28, %v2343_v25  ;;  %v3355_v25 = vld [vmem:[%s7184_s1 + $0x78] sm:$0xf] }
0x1154   :  { %v3006_v6 = vpop.f32.mrb[38].mxu0  ;;  %v2926_v59 = vmul.f32 %v6033_v44, %v6031_v38  ;;  %v3264_v38 = vld [vmem:[%s7182_s2 + $0xc8] sm:$0xff] }
0x1155   :  { %v3012_v50 = vmul.f32 %v3006_v6, %v6641_v23  ;;  %5820 = vmatpush3.bf16.msra.mxu0 %v5819_v2  ;;  %v5466_v17 = vpop.f32.mrb[39].mxu0  ;;  %v5827_v26 = vpack.c.bf16 %v3264_v38, %v3263_v16  ;;  %v5971_v61 = vadd.f32 %v5970_v30, %v6806_v48  ;;  %v5002_v2 = vld [vmem:[%s7182_s2 + $0xa0] ss:$0 sm:$0xff]  ;;  %v5969_v41 = vadd.f32 %v5970_v30, %v6804_v54 }
0x1156   :  { %5471 = vmatprep.subr.mxu0 %v6054_v4 }
0x1157   :  { %v3091_v17 = vmax.f32 %v5971_v61, 0.0  ;;  %v3092_v28 = vmax.f32 %v5969_v41, 0.0 }
0x1159   :  { %5472 = vmatpush3.msra.mxu0 %v3012_v50 }
0x115a   :  { %5474 = vmatmul.mubr.msk.f32.vlgmr.msra.gmra.mrb[40].mxu0 %vm1515_vm10, %v2926_v59  ;;  %5821 = vmatprep.subr.bf16.mxu0 %v6052_v0 }
0x115b   :  { %5823 = vmatpush3.bf16.msra.mxu0 %v5822_v20  ;;  %5480 = vmatprep.mubr.msk.f32.mxu0 %vm6053_vm0, %v6054_v4 }
0x115c   :  { %5824 = vmatprep.subr.bf16.mxu0 %v6052_v0 }
0x115e   :  { %5481 = vmatmul.mubr.msk.f32.vlgmr.msra.gmra.mrb[42].mxu0 %vm175_vm2, %v3097_v60 }
0x115f   :  { %5487 = vmatprep.mubr.msk.f32.mxu0 %vm6053_vm0, %v6054_v4  ;;  %5826 = vmatpush3.bf16.msra.mxu0 %v5825_v8 }
0x1160   :  { %5828 = vmatprep.subr.bf16.mxu0 %v5827_v26 }
0x122d   :  { %v3085_v12 = vpop.f32.mrb[40].mxu0 }
0x122e   :  { %v3086_v53 = vadd.f32 %v3085_v12, %v3014_v35  ;;  %v5475_v42 = vpop.f32.mrb[41].mxu0 }
0x1230   :  { %v3101_v6 = vadd.f32 %v3099_v31, %v3086_v53  ;;  %v3353_v31 = vld [vmem:[%s7184_s1 + $0x68] sm:$0xff] }
0x1231   :  { %v3179_v9 = vpop.f32.mrb[42].mxu0  ;;  %v5845_v61 = vpack.c.bf16 %v3355_v25, %v3353_v31 }
0x1232   :  { %v3102_v44 = vmax.f32 %v3101_v6, 0.0  ;;  %v6875_v13 = vadd.f32 %v5002_v2, %v3179_v9  ;;  %v5482_v50 = vpop.f32.mrb[43].mxu0 }
0x1234   :  { %5488 = vmatmul.mubr.msk.f32.vlgmr.msra.gmra.mrb[44].mxu0 %vm175_vm2, %v3102_v44  ;;  %5012 = vmatmul.mubr.msk.f32.vlgmr.msra.gmra.mrb[26].mxu1 %vm175_vm2, %v6875_v13 }
0x1235   :  { %5830 = vmatpush3.bf16.msra.mxu0 %v5827_v26  ;;  %5494 = vmatprep.mubr.msk.f32.mxu0 %vm175_vm2, %v3091_v17 }
0x1236   :  { %5832 = vmatprep.subr.bf16.mxu0 %v6350_v10  ;;  %3589 = vmatprep.mubr.f32.mxu1 %v6054_v4 }
0x1238   :  { %5495 = vmatmul.mubr.msk.f32.vlgmr.msra.gmra.mrb[46].mxu0 %vm175_vm2, %v3092_v28 }
0x1239   :  { %5834 = vmatpush1.bf16.msra.mxu0 %v6359_v21  ;;  %3428 = vmatprep.mubr.f32.mxu0 %v6054_v4 }
0x123a   :  { %5851 = vmatprep.subr.bf16.mxu0 %v6052_v0 }
0x1307   :  { %v6887_v54 = vpop.f32.mrb[44].mxu0 }
0x1308   :  { %v5489_v48 = vpop.f32.mrb[45].mxu0 }
0x130b   :  { %v5496_v20 = vpop.f32.mrb[46].mxu0 }
0x130c   :  { %v6892_v46 = vadd.f32 %v5496_v20, %v5006_v45  ;;  %v3342_v59 = vpop.f32.mrb[47].mxu0 }
0x130d   :  { %v6894_v60 = vadd.f32 %v5006_v45, %v3342_v59 }
0x130f   :  { %v5891_v3 = vpack.c.bf16 %v6892_v46, %v6894_v60  ;;  %4021 = vrot.lane.b32.xlu1 %v6894_v60, %s6056_s17  ;;  %5010 = vmatmul.mubr.msk.f32.vlgmr.msra.gmra.mrb[48].mxu0 %vm175_vm2, %v6894_v60 }
0x1310   :  { %3434 = vmatprep.mubr.f32.mxu0 %v6054_v4  ;;  %5853 = vmatpush1.bf16.msra.mxu0 %v6384_v27 }
0x1311   :  { %5854 = vmatprep.subr.bf16.mxu0 %v6052_v0 }
0x1313   :  { %4023 = vrot.lane.b32.xlu1 %v6892_v46, %s6056_s17  ;;  %5011 = vmatmul.mubr.msk.f32.gmra.mrb[50].mxu0 %vm175_vm2, %v6892_v46 }
0x1314   :  { %5856 = vmatpush1.bf16.msra.mxu0 %v6390_v29 }
0x1315   :  { %5857 = vmatprep.subr.bf16.mxu0 %v6052_v0 }
0x1318   :  { %5859 = vmatpush1.bf16.msra.mxu0 %v6400_v33 }
0x1319   :  { %5860 = vmatprep.subr.bf16.mxu0 %v6052_v0 }
0x131c   :  { %5862 = vmatpush1.bf16.msra.mxu0 %v6410_v39 }
0x131d   :  { %5863 = vmatprep.subr.bf16.mxu0 %v6052_v0 }
0x1320   :  { %5865 = vmatpush1.bf16.msra.mxu0 %v6420_v43 }
0x1321   :  { %5866 = vmatprep.subr.bf16.mxu0 %v6052_v0 }
0x1324   :  { %5868 = vmatpush1.bf16.msra.mxu0 %v6430_v49 }
0x1325   :  { %5869 = vmatprep.subr.bf16.mxu0 %v6052_v0 }
0x1328   :  { %5871 = vmatpush1.bf16.msra.mxu0 %v6440_v52 }
0x1329   :  { %5872 = vmatprep.subr.bf16.mxu0 %v6052_v0 }
0x132c   :  { %5874 = vmatpush1.bf16.msra.mxu0 %v6450_v58 }
0x132d   :  { %5875 = vmatprep.subr.bf16.mxu0 %v6052_v0 }
0x1330   :  { %5877 = vmatpush1.bf16.msra.mxu0 %v6460_v1 }
0x1331   :  { %5878 = vmatprep.subr.bf16.mxu0 %v6052_v0 }
0x1334   :  { %5880 = vmatpush1.bf16.msra.mxu0 %v6470_v7 }
0x1335   :  { %5881 = vmatprep.subr.bf16.mxu0 %v6052_v0 }
0x1338   :  { %5883 = vmatpush1.bf16.msra.mxu0 %v6539_v62 }
0x1339   :  { %5884 = vmatprep.subr.bf16.mxu0 %v6052_v0 }
0x133c   :  { %5886 = vmatpush1.bf16.msra.mxu0 %v6549_v5 }
0x133d   :  { %5917 = vmatprep.subr.bf16.mxu0 %v6052_v0 }
0x13e2   :  { %v3430_v47 = vpop.f32.mrb[48].mxu0 }
0x13e3   :  { %v3432_v8 = vpop.f32.mrb[49].mxu0  ;;  %v3441_v38 = vmul.f32 %v3430_v47, %v6478_v14  ;;  %v3352_v14 = vld [vmem:[%s7184_s1 + $0x60] sm:$0xff]  ;;  %v7024_v47 = vpop.permute.xlu1 %4021 }
0x13e4   :  { %v3442_v30 = vmul.f32 %v3432_v8, %v6488_v18 }
0x13e6   :  { %v3436_v16 = vpop.f32.mrb[50].mxu0 }
0x13e7   :  { %v3443_v26 = vmul.f32 %v3436_v16, %v6483_v15  ;;  %v3438_v35 = vpop.f32.mrb[51].mxu0  ;;  %v3354_v15 = vld [vmem:[%s7184_s1 + $0x70] sm:$0xf] }
0x13e8   :  { %v3444_v12 = vmul.f32 %v3438_v35, %v6493_v19  ;;  %v5848_v18 = vpack.c.bf16 %v3354_v15, %v3352_v14  ;;  %v5009_v19 = vld [vmem:[%s7184_s1 + $0x150] ss:$8 sm:$0x3]  ;;  %v6043_v35 = vld [vmem:[%s7184_s1 + $0x100] sm:$0xf] }
0x13e9   :  { %v5842_v53 = vpack.c.bf16 %v3443_v26, %v3441_v38  ;;  %v3683_v50 = vrot.slane %v5009_v19, %v6558_v24 }
0x13ea   :  { %v5839_v42 = vpack.c.bf16 %v3444_v12, %v3442_v30  ;;  %v4016_v30 = vld [vmem:[%s7184_s1 + $0x88] sm:$0xff]  ;;  %v4018_v12 = vld [vmem:[%s7184_s1 + $0x98] sm:$0xf] }
0x13ec   :  { %5841 = vmatprep.subr.msk.bf16.mxu1 %vm6505_vm7, %v5839_v42 }
0x13ed   :  { %5844 = vmatpush1.bf16.msk.msra.mxu1 %vm6505_vm7, %v5842_v53  ;;  %v6044_v53 = vld [vmem:[%s7184_s1 + $0xf8] sm:$0xff] }
0x13ee   :  { %5847 = vmatprep.subr.msk.bf16.mxu1 %vm6505_vm7, %v5845_v61  ;;  %v6045_v61 = vld [vmem:[%s7184_s1 + $0x108] sm:$0xf] }
0x13f0   :  { %5015 = vmatmul.mubr.msk.f32.vlgmr.msra.gmra.mrb[26].mxu1 %vm1260_vm8, %v6058_v37 }
0x13f1   :  { %5850 = vmatpush1.bf16.msk.msra.mxu1 %vm6505_vm7, %v5848_v18  ;;  %3666 = vmatprep.mubr.f32.mxu1 %v6054_v4 }
0x13f2   :  { %5887 = vmatprep.subr.bf16.mxu1 %v6052_v0 }
0x13f8   :  { %5018 = vmatmul.mubr.msk.f32.vlgmr.msra.gmra.mrb[26].mxu1 %vm1260_vm8, %v6527_v51  ;;  %v3687_v51 = vrot.slane %v5009_v19, %v6553_v22  ;;  %v5911_v19 = vpack.c.bf16 %v4018_v12, %v4016_v30 }
0x13f9   :  { %5889 = vmatpush3.bf16.msra.mxu1 %v6578_v11  ;;  %5503 = vmatprep.mubr.msk.f32.mxu1 %vm6053_vm0, %v6054_v4 }
0x13fa   :  { %5501 = vmatprep.subr.mxu1 %v6054_v4 }
0x13fd   :  { %5502 = vmatpush3.msra.mxu1 %v6585_v55 }
0x13fe   :  { %5890 = vmatprep.subr.bf16.mxu1 %v6052_v0 }
0x14cb   :  { %v3668_v2 = vpop.f32.mrb[26].mxu1 }
0x14cc   :  { %v3675_v6 = vmul.f32 0.2, %v3668_v2  ;;  %v3670_v9 = vpop.f32.mrb[27].mxu1 }
0x14cd   :  { %v3676_v41 = vmul.f32 0.2, %v3670_v9 }
0x14ce   :  { %v3677_v44 = vmax.f32 %v3668_v2, %v3675_v6  ;;  %v4015_v2 = vld [vmem:[%s7184_s1 + $0x80] sm:$0xff]  ;;  %v4017_v6 = vld [vmem:[%s7184_s1 + $0x90] sm:$0xf] }
0x14cf   :  { %v3678_v17 = vmax.f32 %v3670_v9, %v3676_v41  ;;  %v5914_v9 = vpack.c.bf16 %v4017_v6, %v4015_v2  ;;  %v4847_v6 = vld [vmem:[%s7182_s2 + $0x2b8] sm:$0xff] }
0x14d0   :  { %v3690_v48 = vmul.f32 %v3683_v50, %v3677_v44 }
0x14d1   :  { %v3691_v28 = vmul.f32 %v3687_v51, %v3678_v17 }
0x14d3   :  { %5019 = vmatprep.mubr.msk.f32.mxu0 %vm1441_vm9, %v3691_v28 }
0x14d4   :  { %3760 = vmatmul.mubr.f32.vlgmr.msra.gmra.mrb[52].mxu0 %v3690_v48 }
0x14d5   :  { %5919 = vmatpush1.bf16.msra.mxu0 %v6384_v27 }
0x14d6   :  { %5920 = vmatprep.subr.bf16.mxu0 %v6052_v0 }
0x14d9   :  { %5922 = vmatpush1.bf16.msra.mxu0 %v6390_v29 }
0x14da   :  { %5923 = vmatprep.subr.bf16.mxu0 %v6052_v0 }
0x14dd   :  { %5925 = vmatpush1.bf16.msra.mxu0 %v6400_v33 }
0x14de   :  { %5926 = vmatprep.subr.bf16.mxu0 %v6052_v0 }
0x14e1   :  { %5928 = vmatpush1.bf16.msra.mxu0 %v6410_v39 }
0x14e2   :  { %5929 = vmatprep.subr.bf16.mxu0 %v6052_v0 }
0x14e5   :  { %5931 = vmatpush1.bf16.msra.mxu0 %v6420_v43 }
0x14e6   :  { %5932 = vmatprep.subr.bf16.mxu0 %v6052_v0 }
0x14e9   :  { %5934 = vmatpush1.bf16.msra.mxu0 %v6430_v49 }
0x14ea   :  { %5935 = vmatprep.subr.bf16.mxu0 %v6052_v0 }
0x14ed   :  { %5937 = vmatpush1.bf16.msra.mxu0 %v6440_v52 }
0x14ee   :  { %5938 = vmatprep.subr.bf16.mxu0 %v6052_v0 }
0x14f1   :  { %5940 = vmatpush1.bf16.msra.mxu0 %v6450_v58 }
0x14f2   :  { %5941 = vmatprep.subr.bf16.mxu0 %v6052_v0 }
0x14f5   :  { %5943 = vmatpush1.bf16.msra.mxu0 %v6460_v1 }
0x14f6   :  { %5944 = vmatprep.subr.bf16.mxu0 %v6052_v0 }
0x14f9   :  { %5946 = vmatpush1.bf16.msra.mxu0 %v6470_v7 }
0x14fa   :  { %5947 = vmatprep.subr.bf16.mxu0 %v6052_v0 }
0x14fd   :  { %5949 = vmatpush1.bf16.msra.mxu0 %v6539_v62 }
0x14fe   :  { %5950 = vmatprep.subr.bf16.mxu0 %v6052_v0 }
0x1501   :  { %5952 = vmatpush1.bf16.msra.mxu0 %v6549_v5 }
0x15a7   :  { %v3761_v27 = vpop.f32.mrb[52].mxu0 }
0x15a8   :  { %v3763_v29 = vpop.f32.mrb[53].mxu0  ;;  %v3765_v33 = vsel %vm1515_vm10, %v3761_v27, -inf }
0x15a9   :  { %3766 = vmax.xlane.f32.xlu0 %v3765_v33 }
0x1636   :  { %v3767_v39 = vpop.xlane.xlu0 %3766 }
0x1637   :  { %v3768_v43 = vsub.f32 %v3761_v27, %v3767_v39 }
0x1639   :  { %v3769_v49 = vmul.f32 1.442695, %v3768_v43 }
0x163b   :  { %6034 = vpow2.f32 %v3769_v49 }
0x1645   :  { %v6035_v52 = vpop.eup %6034 }
0x1646   :  { %5504 = vmatmul.mubr.msk.f32.vlgmr.msra.gmra.mrb[28].mxu1 %vm1515_vm10, %v6035_v52 }
0x1647   :  { %5893 = vmatpush3.bf16.msk.msra.mxu1 %vm6505_vm7, %v5891_v3  ;;  %5510 = vmatprep.mubr.msk.f32.mxu1 %vm6053_vm0, %v6054_v4 }
0x1648   :  { %5894 = vmatprep.subr.bf16.mxu1 %v6052_v0 }
0x164a   :  { %5511 = vmatmul.mubr.msk.f32.vlgmr.msra.gmra.mrb[30].mxu1 %vm1260_vm8, %v6599_v32 }
0x164b   :  { %5513 = vmatprep.mubr.msk.f32.mxu1 %vm6053_vm0, %v6054_v4 }
0x164e   :  { %5514 = vmatmul.mubr.msk.f32.gmra.mrb[32].mxu1 %vm1260_vm8, %v6609_v34 }
0x164f   :  { %5516 = vmatprep.mubr.msk.f32.mxu1 %vm6053_vm0, %v6054_v4 }
0x1652   :  { %5517 = vmatmul.mubr.msk.f32.gmra.mrb[34].mxu1 %vm1260_vm8, %v6618_v40 }
0x1653   :  { %5525 = vmatprep.mubr.msk.f32.mxu1 %vm6053_vm0, %v6054_v4 }
0x1719   :  { %v3840_v58 = vpop.f32.mrb[28].mxu1 }
0x171a   :  { %v5505_v1 = vpop.f32.mrb[29].mxu1  ;;  %6036 = vrcp.f32 %v3840_v58  ;;  %v6047_v58 = vld [vmem:[%s7182_s2 + $0x238] sm:$0xff] }
0x171d   :  { %v3914_v7 = vpop.f32.mrb[30].mxu1 }
0x171e   :  { %v5512_v62 = vpop.f32.mrb[31].mxu1  ;;  %v3928_v32 = vmul.f32 %v3914_v7, %v6629_v57  ;;  %v5004_v57 = vld [vmem:[%s7182_s2 + $0xb8] ss:$0 sm:$0xff] }
0x1721   :  { %v3919_v5 = vpop.f32.mrb[32].mxu1 }
0x1722   :  { %v3929_v45 = vmul.f32 %v3919_v5, %v6634_v63  ;;  %v5515_v34 = vpop.f32.mrb[33].mxu1  ;;  %v7036_v63 = vpop.permute.xlu1 %4023 }
0x1724   :  { %v5895_v20 = vpack.c.bf16 %v3929_v45, %v3928_v32  ;;  %v6037_v59 = vpop.eup %6036  ;;  %v6049_v45 = vld [vmem:[%s7182_s2 + $0x258] sm:$0xff] }
0x1725   :  { %v3924_v46 = vpop.f32.mrb[34].mxu1  ;;  %v3845_v3 = vmul.f32 %v6037_v59, %v6035_v52 }
0x1726   :  { %v3930_v60 = vmul.f32 %v3924_v46, %v6641_v23  ;;  %5896 = vmatpush3.bf16.msra.mxu1 %v5895_v20  ;;  %v5518_v40 = vpop.f32.mrb[35].mxu1  ;;  %v6050_v20 = vld [vmem:[%s7182_s2 + $0x260] sm:$0xff] }
0x1727   :  { %5523 = vmatprep.subr.mxu1 %v6054_v4 }
0x172a   :  { %5524 = vmatpush3.msra.mxu1 %v3930_v60 }
0x172b   :  { %5526 = vmatmul.mubr.msk.f32.vlgmr.msra.gmra.mrb[36].mxu1 %vm1515_vm10, %v3845_v3  ;;  %5898 = vmatprep.subr.bf16.mxu1 %v6350_v10 }
0x172c   :  { %5900 = vmatpush1.bf16.msra.mxu1 %v6359_v21  ;;  %4093 = vmatprep.mubr.f32.mxu1 %v6054_v4 }
0x172d   :  { %5902 = vmatprep.subr.bf16.mxu1 %v6350_v10  ;;  %v7042_v10 = vadd.f32 %v5004_v57, %v6887_v54  ;;  %v6042_v54 = vld [vmem:[%s7184_s1 + $0xf0] sm:$0xff] }
0x172f   :  { %5028 = vmatmul.mubr.msk.f32.vlgmr.msra.gmra.mrb[38].mxu1 %vm175_vm2, %v7024_v47 }
0x1730   :  { %4099 = vmatprep.mubr.f32.mxu1 %v6054_v4  ;;  %5904 = vmatpush1.bf16.msra.mxu1 %v6359_v21 }
0x1733   :  { %5029 = vmatmul.mubr.msk.f32.gmra.mrb[40].mxu1 %vm175_vm2, %v7036_v63 }
0x1734   :  { %4177 = vmatprep.mubr.f32.mxu1 %v6054_v4 }
0x1737   :  { %5030 = vmatmul.mubr.msk.f32.vlgmr.msra.gmra.mrb[42].mxu1 %vm175_vm2, %v7042_v10 }
0x1738   :  { %4254 = vmatprep.mubr.f32.mxu1 %v6054_v4 }
0x17fe   :  { %v7047_v21 = vpop.f32.mrb[36].mxu1 }
0x17ff   :  { %4005 = vrot.lane.b32.xlu0 %v7047_v21, %s6065_s12  ;;  %v5527_v23 = vpop.f32.mrb[37].mxu1 }
0x1802   :  { %v4095_v8 = vpop.f32.mrb[38].mxu1 }
0x1803   :  { %v4097_v16 = vpop.f32.mrb[39].mxu1  ;;  %v4106_v26 = vmul.f32 %v6042_v54, %v4095_v8  ;;  %v4692_v8 = vld [vmem:[%s7182_s2 + $0x2a0] sm:$0xff]  ;;  %v5026_v54 = vld [vmem:[%s7182_s2 + $0xd8] ss:$0 sm:$0xff] }
0x1804   :  { %v4107_v42 = vmul.f32 %v6044_v53, %v4097_v16 }
0x1806   :  { %v4101_v38 = vpop.f32.mrb[40].mxu1 }
0x1807   :  { %v4108_v31 = vmul.f32 %v6043_v35, %v4101_v38  ;;  %v4103_v25 = vpop.f32.mrb[41].mxu1 }
0x1808   :  { %v4109_v14 = vmul.f32 %v6045_v61, %v4103_v25 }
0x1809   :  { %v5908_v15 = vpack.c.bf16 %v4108_v31, %v4106_v26 }
0x180a   :  { %v5905_v18 = vpack.c.bf16 %v4109_v14, %v4107_v42 }
0x180c   :  { %5907 = vmatprep.subr.msk.bf16.mxu1 %vm6505_vm7, %v5905_v18 }
0x180d   :  { %5910 = vmatpush1.bf16.msk.msra.mxu1 %vm6505_vm7, %v5908_v15 }
0x180e   :  { %5913 = vmatprep.subr.msk.bf16.mxu1 %vm6505_vm7, %v5911_v19 }
0x1810   :  { %5033 = vmatmul.mubr.msk.f32.vlgmr.msra.gmra.mrb[42].mxu1 %vm1260_vm8, %v6058_v37  ;;  %v5027_v37 = vld [vmem:[%s7184_s1 + $0x160] ss:$8 sm:$0x3] }
0x1811   :  { %5916 = vmatpush1.bf16.msk.msra.mxu1 %vm6505_vm7, %v5914_v9  ;;  %4331 = vmatprep.mubr.f32.mxu1 %v6054_v4  ;;  %v4348_v17 = vrot.slane %v5027_v37, %v6558_v24  ;;  %v6046_v24 = vld [vmem:[%s7182_s2 + $0x230] sm:$0xff] }
0x1812   :  { %5953 = vmatprep.subr.bf16.mxu1 %v6052_v0 }
0x1818   :  { %5036 = vmatmul.mubr.msk.f32.vlgmr.msra.gmra.mrb[42].mxu1 %vm1260_vm8, %v6776_v56  ;;  %v4352_v56 = vrot.slane %v5027_v37, %v6553_v22  ;;  %v5957_v22 = vpack.c.bf16 %v7036_v63, %v7024_v47  ;;  %v6051_v47 = vld [vmem:[%s7182_s2 + $0x268] sm:$0xff] }
0x1819   :  { %5955 = vmatpush3.bf16.msra.mxu1 %v6578_v11  ;;  %5534 = vmatprep.mubr.msk.f32.mxu1 %vm6053_vm0, %v6054_v4 }
0x181a   :  { %5532 = vmatprep.subr.mxu1 %v6054_v4 }
0x181d   :  { %5533 = vmatpush3.msra.mxu1 %v6585_v55 }
0x181e   :  { %5956 = vmatprep.subr.bf16.mxu1 %v6052_v0 }
0x1871   :  { %v4006_v26 = vpop.permute.xlu0 %4005 }
0x1872   :  { %v4008_v25 = vadd.f32 %v4006_v26, %v7047_v21  ;;  %v4846_v21 = vld [vmem:[%s7182_s2 + $0x2b0] sm:$0xff] }
0x1873   :  { %v5964_v9 = vpack.c.bf16 %v4847_v6, %v4846_v21 }
0x1874   :  { %v4009_v53 = vmul.f32 0.5, %v4008_v25 }
0x1876   :  { %v4014_v18 = vadd.f32 %v5026_v54, %v4009_v53 }
0x18eb   :  { %v4333_v41 = vpop.f32.mrb[42].mxu1 }
0x18ec   :  { %v4340_v51 = vmul.f32 0.2, %v4333_v41  ;;  %v4335_v44 = vpop.f32.mrb[43].mxu1 }
0x18ed   :  { %v4341_v50 = vmul.f32 0.2, %v4335_v44 }
0x18ee   :  { %v4342_v11 = vmax.f32 %v4333_v41, %v4340_v51 }
0x18ef   :  { %v4343_v28 = vmax.f32 %v4335_v44, %v4341_v50 }
0x18f0   :  { %v4355_v27 = vmul.f32 %v4348_v17, %v4342_v11  ;;  %v5047_v11 = vld [vmem:[%s7182_s2 + $0x2c0] ss:$0 sm:$0xff] }
0x18f1   :  { %v4356_v48 = vmul.f32 %v4352_v56, %v4343_v28 }
0x18f3   :  { %5037 = vmatprep.mubr.msk.f32.mxu0 %vm1441_vm9, %v4356_v48 }
0x18f4   :  { %4425 = vmatmul.mubr.f32.vlgmr.msra.gmra.mrb[54].mxu0 %v4355_v27 }
0x19c7   :  { %v4426_v55 = vpop.f32.mrb[54].mxu0 }
0x19c8   :  { %v4428_v29 = vpop.f32.mrb[55].mxu0  ;;  %v4430_v33 = vsel %vm1515_vm10, %v4426_v55, -inf }
0x19c9   :  { %4431 = vmax.xlane.f32.xlu1 %v4430_v33 }
0x1a56   :  { %v4432_v39 = vpop.xlane.xlu1 %4431 }
0x1a57   :  { %v4433_v43 = vsub.f32 %v4426_v55, %v4432_v39 }
0x1a59   :  { %v4434_v49 = vmul.f32 1.442695, %v4433_v43 }
0x1a5b   :  { %6038 = vpow2.f32 %v4434_v49 }
0x1a65   :  { %v6039_v52 = vpop.eup %6038 }
0x1a66   :  { %5535 = vmatmul.mubr.msk.f32.vlgmr.msra.gmra.mrb[44].mxu1 %vm1515_vm10, %v6039_v52 }
0x1a67   :  { %5959 = vmatpush3.bf16.msk.msra.mxu1 %vm6505_vm7, %v5957_v22  ;;  %5541 = vmatprep.mubr.msk.f32.mxu1 %vm6053_vm0, %v6054_v4 }
0x1a68   :  { %5960 = vmatprep.subr.bf16.mxu1 %v6052_v0 }
0x1a6a   :  { %5542 = vmatmul.mubr.msk.f32.vlgmr.msra.gmra.mrb[46].mxu1 %vm1260_vm8, %v6046_v24 }
0x1a6b   :  { %5544 = vmatprep.mubr.msk.f32.mxu1 %vm6053_vm0, %v6054_v4 }
0x1a6e   :  { %5545 = vmatmul.mubr.msk.f32.gmra.mrb[48].mxu1 %vm1260_vm8, %v6047_v58 }
0x1a6f   :  { %5547 = vmatprep.mubr.msk.f32.mxu1 %vm6053_vm0, %v6054_v4 }
0x1a72   :  { %5548 = vmatmul.mubr.msk.f32.gmra.mrb[50].mxu1 %vm1260_vm8, %v6048_v36 }
0x1a73   :  { %5556 = vmatprep.mubr.msk.f32.mxu1 %vm6053_vm0, %v6054_v4 }
0x1b39   :  { %v4505_v1 = vpop.f32.mrb[44].mxu1 }
0x1b3a   :  { %v5536_v7 = vpop.f32.mrb[45].mxu1  ;;  %6040 = vrcp.f32 %v4505_v1 }
0x1b3d   :  { %v4580_v62 = vpop.f32.mrb[46].mxu1 }
0x1b3e   :  { %v5543_v5 = vpop.f32.mrb[47].mxu1  ;;  %v4594_v34 = vmul.f32 %v6049_v45, %v4580_v62 }
0x1b41   :  { %v4585_v32 = vpop.f32.mrb[48].mxu1 }
0x1b42   :  { %v4595_v46 = vmul.f32 %v6050_v20, %v4585_v32  ;;  %v5546_v59 = vpop.f32.mrb[49].mxu1 }
0x1b44   :  { %v5961_v60 = vpack.c.bf16 %v4595_v46, %v4594_v34  ;;  %v6041_v3 = vpop.eup %6040 }
0x1b45   :  { %v4590_v40 = vpop.f32.mrb[50].mxu1  ;;  %v4510_v23 = vmul.f32 %v6041_v3, %v6039_v52 }
0x1b46   :  { %5962 = vmatpush3.bf16.msra.mxu1 %v5961_v60  ;;  %v4596_v57 = vmul.f32 %v6051_v47, %v4590_v40  ;;  %v5549_v63 = vpop.f32.mrb[51].mxu1 }
0x1b47   :  { %5554 = vmatprep.subr.mxu1 %v6054_v4 }
0x1b4a   :  { %5555 = vmatpush3.msra.mxu1 %v4596_v57 }
0x1b4b   :  { %5557 = vmatmul.mubr.msk.f32.vlgmr.msra.gmra.mrb[52].mxu1 %vm1515_vm10, %v4510_v23  ;;  %5559 = vmatprep.subr.mxu1 %v6054_v4 }
0x1b4c   :  { %5561 = vmatprep.mubr.msk.f32.mxu1 %vm6053_vm0, %v6054_v4  ;;  %5560 = vmatpush3.msra.mxu1 %v4692_v8 }
0x1b4d   :  { %5564 = vmatprep.subr.mxu1 %v6054_v4 }
0x1c1e   :  { %v4666_v16 = vpop.f32.mrb[52].mxu1 }
0x1c1f   :  { %4671 = vrot.lane.b32.xlu0 %v4666_v16, %s6065_s12  ;;  %v5558_v38 = vpop.f32.mrb[53].mxu1 }
0x1c23   :  { %4677 = vrot.lane.b32.xlu0 %v5026_v54, %s6065_s12 }
0x1c27   :  { %4686 = vrot.lane.b32.xlu0 %v7042_v10, %s6056_s17  ;;  %v4691_v10 = vld [vmem:[%s7182_s2 + $0x298] sm:$0xff] }
0x1c2b   :  { %4681 = vrot.lane.b32.xlu0 %v6875_v13, %s6056_s17 }
0x1c91   :  { %v4672_v35 = vpop.permute.xlu0 %4671 }
0x1c92   :  { %v4674_v31 = vadd.f32 %v4672_v35, %v4666_v16 }
0x1c94   :  { %v4675_v30 = vmul.f32 0.5, %v4674_v31 }
0x1c95   :  { %v4678_v12 = vpop.permute.xlu0 %4677 }
0x1c96   :  { %v4680_v42 = vadd.f32 %v4678_v12, %v4675_v30 }
0x1c99   :  { %v4687_v61 = vpop.permute.xlu0 %4686 }
0x1c9a   :  { %v4689_v14 = vadd.f32 %v4687_v61, %v4680_v42 }
0x1c9c   :  { %v4690_v15 = vmax.f32 %v4689_v14, 0.0 }
0x1c9d   :  { %v4682_v19 = vpop.permute.xlu0 %4681 }
0x1c9e   :  { %v4684_v2 = vadd.f32 %v4682_v19, %v4014_v18  ;;  %5562 = vmatmul.mubr.msk.f32.vlgmr.msra.gmra.mrb[54].mxu1 %vm583_vm3, %v4690_v15 }
0x1c9f   :  { %5565 = vmatpush3.msra.mxu1 %v4691_v10  ;;  %5566 = vmatprep.mubr.msk.f32.mxu1 %vm6053_vm0, %v6054_v4 }
0x1ca0   :  { %v4685_v13 = vmax.f32 %v4684_v2, 0.0  ;;  %5963 = vmatprep.subr.bf16.mxu1 %v6052_v0  ;;  %v5046_v0 = vld [vmem:[%s7182_s2 + $0x2a8] ss:$0 sm:$0xff] }
0x1ca2   :  { %5567 = vmatmul.mubr.msk.f32.vlgmr.msra.gmra.mrb[56].mxu1 %vm583_vm3, %v4685_v13 }
0x1ca3   :  { %5573 = vmatprep.mubr.msk.f32.mxu1 %vm6053_vm0, %v6054_v4  ;;  %5965 = vmatpush3.bf16.msra.mxu1 %v5964_v9 }
0x1d71   :  { %v4762_v37 = vpop.f32.mrb[54].mxu1 }
0x1d72   :  { %v5563_v41 = vpop.f32.mrb[55].mxu1 }
0x1d75   :  { %v4835_v51 = vpop.f32.mrb[56].mxu1 }
0x1d76   :  { %v4836_v44 = vadd.f32 %v4835_v51, %v4762_v37  ;;  %v5568_v50 = vpop.f32.mrb[57].mxu1 }
0x1d78   :  { %v4844_v4 = vadd.f32 %v5046_v0, %v4836_v44 }
0x1d7a   :  { %v4845_v56 = vmax.f32 %v4844_v4, 0.0 }
0x1d7c   :  { %5574 = vmatmul.mubr.msk.f32.vlgmr.msra.gmra.mrb[58].mxu1 %vm175_vm2, %v4845_v56 }
0x1e4f   :  { %v4922_v17 = vpop.f32.mrb[58].mxu1 }
0x1e50   :  { %v4923_v28 = vadd.f32 %v5047_v11, %v4922_v17  ;;  %v5575_v48 = vpop.f32.mrb[59].mxu1 }
0x1e52   :  { %4927 = vst.msk [vmem:[%s7185_s3] sm:$0xff] %vm4926_vm11, %v4923_v28 }

</bundles_post_ra>
